<compile_context>
chip_gen: v7x
topology: tpu7x:2x2x1
jax: 0.10.0
libtpu: 0.0.40
codegen_flags: <defaults>
</compile_context>

<pallas_src>
import functools

import jax
import jax.numpy as jnp
from jax.experimental import pallas as pl
from jax.experimental.pallas import tpu as pltpu

EPS = 1e-5

_LAYER_WEIGHT_NAMES = ["ln1_w", "ln1_b", "w_qkv", "b_qkv", "w_out", "b_out",
                       "ln2_w", "ln2_b", "w_fc", "b_fc", "w_proj", "b_proj"]
_BIG_WEIGHTS = ("w_qkv", "w_out", "w_fc", "w_proj")


def _vmem_limit_bytes():
    # ~75% of physical VMEM, capped at 100 MB (v5e/v6e: ~96 MB, v7x: ~48 MB).
    try:
        cap = pltpu.get_tpu_info().vmem_capacity_bytes
    except Exception:
        cap = 64 * 1024 * 1024
    return int(min(100 * 1024 * 1024, max(32 * 1024 * 1024, cap * 3 // 4)))


def _pick_batch_tile(B, S, target_rows=1024):
    # Big batch tiles cut per-tile weight re-streaming; keep >=2 tiles so the
    # v7x megacore "parallel" batch axis has work for both TensorCores.
    cap = max(1, target_rows // max(S, 1))
    if B >= 2:
        cap = min(cap, B // 2)
    cap = min(cap, B)
    for bt in range(cap, 0, -1):
        if B % bt == 0:
            return bt
    return 1


def stack_layer_params(layers, weight_dtype=jnp.float32):
    """Stack per-layer weights into (L, ...) arrays.  Call OUTSIDE jit."""
    stacked = {}
    for name in _LAYER_WEIGHT_NAMES:
        w = jnp.stack([lp[name] for lp in layers], axis=0)
        if name in _BIG_WEIGHTS:
            w = w.astype(weight_dtype)   # bf16 recommended on v7x
        stacked[name] = w
    return stacked


# ----------------------------------------------------------------------------
# Fused kernel: pos-add + L residual attention blocks + ln_final + EOT head
# ----------------------------------------------------------------------------
def _encoder_kernel(eot_ref, x_ref, pos_ref,
                    ln1w_ref, ln1b_ref, wqkv_ref, bqkv_ref,
                    wout_ref, bout_ref, ln2w_ref, ln2b_ref,
                    wfc_ref, bfc_ref, wproj_ref, bproj_ref,
                    lnfw_ref, lnfb_ref, proj_ref,
                    o_ref, acc_ref, *, num_heads, seq_real):
    layer = pl.program_id(1)
    bt_i = pl.program_id(0)

    Bt, S, D = acc_ref.shape
    N = Bt * S
    H = num_heads
    Dh = D // H
    scale = Dh ** -0.5
    NEG = -1e30

    # Seed the VMEM-resident activation once per batch tile (pos add fused in).
    @pl.when(layer == 0)
    def _():
        acc_ref[...] = x_ref[...] + pos_ref[...]

    def layernorm(v, w, b):
        mu = jnp.mean(v, axis=-1, keepdims=True)
        var = jnp.mean((v - mu) ** 2, axis=-1, keepdims=True)
        return (v - mu) * jax.lax.rsqrt(var + EPS) * w + b

    def matmul(a, w_ref, b_ref):
        w = w_ref[0]
        y = jnp.dot(a.astype(w.dtype), w, preferred_element_type=jnp.float32)
        return y + b_ref[0]

    # (Bt,S,D) -> (Bt*S,D) is a free relabel (S padded to a sublane multiple).
    x = acc_ref[...].reshape(N, D)

    # ---- attention branch ----
    xn = layernorm(x, ln1w_ref[0], ln1b_ref[0])
    qkv = matmul(xn, wqkv_ref, bqkv_ref)                 # (N, 3D), one MXU pass
    q3 = (qkv[:, :D] * scale).reshape(Bt, S, D)          # scale folded into q
    k3 = qkv[:, D:2 * D].reshape(Bt, S, D)
    v3 = qkv[:, 2 * D:].reshape(Bt, S, D)

    # Causal + padding mask built in-kernel (no DMA'd mask operand).
    rr = jax.lax.broadcasted_iota(jnp.int32, (S, S), 0)
    cc = jax.lax.broadcasted_iota(jnp.int32, (S, S), 1)
    mask = jnp.where((cc <= rr) & (cc < seq_real), 0.0, NEG).astype(jnp.float32)

    # Loop over heads only (H, not Bt*H); each head is batched over Bt with a
    # single-batch-dim dot_general (no per-(b,h) slicing / stacking).
    head_outs = []
    for h in range(H):
        sl = slice(h * Dh, (h + 1) * Dh)
        qh, kh, vh = q3[:, :, sl], k3[:, :, sl], v3[:, :, sl]      # (Bt,S,Dh)
        s = jax.lax.dot_general(qh, kh, (((2,), (2,)), ((0,), (0,))),
                                preferred_element_type=jnp.float32)  # (Bt,S,S)
        s = s + mask
        s = s - jnp.max(s, axis=-1, keepdims=True)
        p = jnp.exp(s)
        p = p * pl.reciprocal(jnp.sum(p, axis=-1, keepdims=True), approx=True)
        head_outs.append(jax.lax.dot_general(
            p, vh, (((2,), (1,)), ((0,), (0,))),
            preferred_element_type=jnp.float32))                    # (Bt,S,Dh)
    attn = jnp.concatenate(head_outs, axis=-1).reshape(N, D)
    x = x + matmul(attn, wout_ref, bout_ref)

    # ---- MLP branch (QuickGELU as in CLIP) ----
    xn2 = layernorm(x, ln2w_ref[0], ln2b_ref[0])
    h1 = matmul(xn2, wfc_ref, bfc_ref)
    h1 = h1 * jax.nn.sigmoid(1.702 * h1)
    x = x + matmul(h1, wproj_ref, bproj_ref)

    acc_ref[...] = x.reshape(Bt, S, D)

    # ---- fused final head (last layer only) ----
    @pl.when(layer == pl.num_programs(1) - 1)
    def _():
        sel_rows = []
        for b in range(Bt):
            e = eot_ref[bt_i * Bt + b]                   # EOT index from SMEM
            sel_rows.append(acc_ref[b, pl.ds(e, 1), :])  # (1, D)
        sel = sel_rows[0] if Bt == 1 else jnp.concatenate(sel_rows, axis=0)
        mu = jnp.mean(sel, axis=-1, keepdims=True)
        var = jnp.mean((sel - mu) ** 2, axis=-1, keepdims=True)
        xn_f = (sel - mu) * jax.lax.rsqrt(var + EPS) * lnfw_ref[...] + lnfb_ref[...]
        o_ref[0] = jnp.dot(xn_f, proj_ref[...],
                           preferred_element_type=jnp.float32)       # (Bt, P)


def text_encoder_forward(tokens, head_params, stacked, *, num_heads):
    """tokens: (B, S) int32.  head_params: tok_emb/pos_emb/ln_f_*/text_proj.
    stacked: per-layer weights pre-stacked to (L, ...) (stack_layer_params)."""
    B, S = tokens.shape
    D = head_params["tok_emb"].shape[1]
    P = head_params["text_proj"].shape[1]
    L = stacked["w_qkv"].shape[0]

    # Pad S to a sublane multiple so in-kernel reshapes are free relabels.
    S_pad = ((S + 7) // 8) * 8

    # Token-embedding gather with XLA (review: beats a per-token Pallas grid);
    # positional add is fused into the kernel's layer==0 branch.
    x_emb = jnp.take(head_params["tok_emb"], tokens, axis=0)   # (B, S, D)
    pos = head_params["pos_emb"]
    if S_pad != S:
        x_emb = jnp.pad(x_emb, ((0, 0), (0, S_pad - S), (0, 0)))
        pos = jnp.pad(pos, ((0, S_pad - S), (0, 0)))

    # EOT index per sequence (largest token id, as in CLIP).
    eot = jnp.argmax(tokens, axis=-1).astype(jnp.int32)

    Bt = _pick_batch_tile(B, S_pad)
    weights = [stacked[n] for n in _LAYER_WEIGHT_NAMES]

    def resident_spec(shape):
        return pl.BlockSpec(tuple(shape),
                            lambda bt_i, l, eot_r: (0,) * len(shape))

    def layer_spec(w):
        blk = (1,) + tuple(w.shape[1:])
        return pl.BlockSpec(blk,
                            lambda bt_i, l, eot_r: (l,) + (0,) * (len(blk) - 1))

    kernel = functools.partial(_encoder_kernel, num_heads=num_heads, seq_real=S)

    out3 = pl.pallas_call(
        kernel,
        out_shape=jax.ShapeDtypeStruct((B // Bt, Bt, P), jnp.float32),
        grid_spec=pltpu.PrefetchScalarGridSpec(
            num_scalar_prefetch=1,
            grid=(B // Bt, L),
            in_specs=[
                # embedded activations: one fetch per batch tile (constant in l)
                pl.BlockSpec((Bt, S_pad, D), lambda bt_i, l, eot_r: (bt_i, 0, 0)),
                resident_spec((S_pad, D)),                       # positional emb
            ] + [layer_spec(w) for w in weights] + [             # streamed per layer
                resident_spec(head_params["ln_f_w"].shape),
                resident_spec(head_params["ln_f_b"].shape),
                resident_spec(head_params["text_proj"].shape),
            ],
            # (1, Bt, P) output block, constant across l -> written back once
            # per batch tile after the last layer.
            out_specs=pl.BlockSpec((1, Bt, P), lambda bt_i, l, eot_r: (bt_i, 0, 0)),
            # activation stays resident in VMEM across all L layers
            scratch_shapes=[pltpu.VMEM((Bt, S_pad, D), jnp.float32)],
        ),
        compiler_params=pltpu.CompilerParams(
            dimension_semantics=("parallel", "arbitrary"),
            vmem_limit_bytes=_vmem_limit_bytes(),
        ),
    )(eot, x_emb, pos, *weights,
      head_params["ln_f_w"], head_params["ln_f_b"], head_params["text_proj"])

    return out3.reshape(B, P)


# ----------------------------------------------------------------------------
# Pure-JAX reference (mirrors the PyTorch TextEncoder forward)
# ----------------------------------------------------------------------------
def reference_forward(tokens, params, num_heads):
    x = params["tok_emb"][tokens] + params["pos_emb"][None]
    B, S, D = x.shape
    H, Dh = num_heads, D // num_heads
    r = jnp.arange(S)[:, None]
    c = jnp.arange(S)[None, :]
    mask = jnp.where(c <= r, 0.0, -1e30)

    def ln(v, w, b):
        mu = v.mean(-1, keepdims=True)
        var = ((v - mu) ** 2).mean(-1, keepdims=True)
        return (v - mu) / jnp.sqrt(var + EPS) * w + b

    for lp in params["layers"]:
        xn = ln(x, lp["ln1_w"], lp["ln1_b"])
        qkv = xn @ lp["w_qkv"] + lp["b_qkv"]
        q, k, v = jnp.split(qkv, 3, axis=-1)
        q = q.reshape(B, S, H, Dh)
        k = k.reshape(B, S, H, Dh)
        v = v.reshape(B, S, H, Dh)
        s = jnp.einsum("bqhd,bkhd->bhqk", q, k) / (Dh ** 0.5) + mask
        p = jax.nn.softmax(s, axis=-1)
        a = jnp.einsum("bhqk,bkhd->bqhd", p, v).reshape(B, S, D)
        x = x + a @ lp["w_out"] + lp["b_out"]
        xn2 = ln(x, lp["ln2_w"], lp["ln2_b"])
        h1 = xn2 @ lp["w_fc"] + lp["b_fc"]
        h1 = h1 * jax.nn.sigmoid(1.702 * h1)
        x = x + h1 @ lp["w_proj"] + lp["b_proj"]
    xf = ln(x, params["ln_f_w"], params["ln_f_b"])
    eot = jnp.argmax(tokens, axis=-1)
    sel = xf[jnp.arange(B), eot]
    return sel @ params["text_proj"]


def init_params(key, V, S, D, L, P):
    keys = jax.random.split(key, 3 + L)
    p = {
        "tok_emb": jax.random.normal(keys[0], (V, D), jnp.float32) * 0.02,
        "pos_emb": jax.random.normal(keys[1], (S, D), jnp.float32) * 0.01,
        "ln_f_w": jnp.ones((1, D), jnp.float32),
        "ln_f_b": jnp.zeros((1, D), jnp.float32),
        "text_proj": jax.random.normal(keys[2], (D, P), jnp.float32) * (D ** -0.5),
        "layers": [],
    }
    for l in range(L):
        k = jax.random.split(keys[3 + l], 4)
        p["layers"].append(dict(
            ln1_w=jnp.ones((1, D), jnp.float32),
            ln1_b=jnp.zeros((1, D), jnp.float32),
            w_qkv=jax.random.normal(k[0], (D, 3 * D), jnp.float32) * (D ** -0.5),
            b_qkv=jnp.zeros((1, 3 * D), jnp.float32),
            w_out=jax.random.normal(k[1], (D, D), jnp.float32) * (D ** -0.5),
            b_out=jnp.zeros((1, D), jnp.float32),
            ln2_w=jnp.ones((1, D), jnp.float32),
            ln2_b=jnp.zeros((1, D), jnp.float32),
            w_fc=jax.random.normal(k[2], (D, 4 * D), jnp.float32) * (D ** -0.5),
            b_fc=jnp.zeros((1, 4 * D), jnp.float32),
            w_proj=jax.random.normal(k[3], (4 * D, D), jnp.float32) * ((4 * D) ** -0.5),
            b_proj=jnp.zeros((1, D), jnp.float32),
        ))
    return p


if __name__ == "__main__":
    B, S, D, H, L = 2, 8, 128, 4, 2     # batch, seq, width, heads, layers
    V, P = 64, 64                       # vocab size, text-projection dim

    key = jax.random.PRNGKey(0)
    pkey, tkey = jax.random.split(key)
    params = init_params(pkey, V, S, D, L, P)
    tokens = jax.random.randint(tkey, (B, S), 1, V, dtype=jnp.int32)

    # Pre-stack layer weights once, outside the jitted forward (no per-call
    # re-stacking HBM traffic).  Use weight_dtype=jnp.bfloat16 on v7x.
    stacked = stack_layer_params(params["layers"], weight_dtype=jnp.float32)
    head_params = {k: v for k, v in params.items() if k != "layers"}

    fwd = jax.jit(functools.partial(text_encoder_forward, num_heads=H))
    out = jax.block_until_ready(fwd(tokens, head_params, stacked))

    ref = reference_forward(tokens, params, H)
    assert out.shape == (B, P)
    assert jnp.allclose(out, ref, atol=5e-3, rtol=5e-3), "mismatch vs reference"

    print("KERNEL_OK")
</pallas_src>

<mosaic_0001>
module attributes {stable_mosaic.version = 11 : i64} {
  func.func @_encoder_kernel(%arg0: i32, %arg1: i32, %arg2: memref<2xi32, #tpu.memory_space<smem>>, %arg3: memref<1x8x128xf32, #tpu.memory_space<vmem>>, %arg4: memref<8x128xf32, #tpu.memory_space<vmem>>, %arg5: memref<1x1x128xf32, #tpu.memory_space<vmem>>, %arg6: memref<1x1x128xf32, #tpu.memory_space<vmem>>, %arg7: memref<1x128x384xf32, #tpu.memory_space<vmem>>, %arg8: memref<1x1x384xf32, #tpu.memory_space<vmem>>, %arg9: memref<1x128x128xf32, #tpu.memory_space<vmem>>, %arg10: memref<1x1x128xf32, #tpu.memory_space<vmem>>, %arg11: memref<1x1x128xf32, #tpu.memory_space<vmem>>, %arg12: memref<1x1x128xf32, #tpu.memory_space<vmem>>, %arg13: memref<1x128x512xf32, #tpu.memory_space<vmem>>, %arg14: memref<1x1x512xf32, #tpu.memory_space<vmem>>, %arg15: memref<1x512x128xf32, #tpu.memory_space<vmem>>, %arg16: memref<1x1x128xf32, #tpu.memory_space<vmem>>, %arg17: memref<1x128xf32, #tpu.memory_space<vmem>>, %arg18: memref<1x128xf32, #tpu.memory_space<vmem>>, %arg19: memref<128x64xf32, #tpu.memory_space<vmem>>, %arg20: memref<1x1x64xf32, #tpu.memory_space<vmem>>, %arg21: memref<1x8x128xf32, #tpu.memory_space<vmem>>) attributes {dimension_semantics = [#tpu.dimension_semantics<parallel>, #tpu.dimension_semantics<arbitrary>], iteration_bounds = array<i64: 2, 2>, scalar_prefetch = 1 : i64, scratch_operands = 1 : i64, tpu.core_type = #tpu.core_type<tc>, window_params = [{transform_indices = @transform_0, window_bounds = array<i64: 1, 8, 128>}, {pipeline_mode = #tpu.pipeline_mode<synchronous>, transform_indices = @transform_1, window_bounds = array<i64: 8, 128>}, {transform_indices = @transform_2, window_bounds = array<i64: 1, 1, 128>}, {transform_indices = @transform_3, window_bounds = array<i64: 1, 1, 128>}, {transform_indices = @transform_4, window_bounds = array<i64: 1, 128, 384>}, {transform_indices = @transform_5, window_bounds = array<i64: 1, 1, 384>}, {transform_indices = @transform_6, window_bounds = array<i64: 1, 128, 128>}, {transform_indices = @transform_7, window_bounds = array<i64: 1, 1, 128>}, {transform_indices = @transform_8, window_bounds = array<i64: 1, 1, 128>}, {transform_indices = @transform_9, window_bounds = array<i64: 1, 1, 128>}, {transform_indices = @transform_10, window_bounds = array<i64: 1, 128, 512>}, {transform_indices = @transform_11, window_bounds = array<i64: 1, 1, 512>}, {transform_indices = @transform_12, window_bounds = array<i64: 1, 512, 128>}, {transform_indices = @transform_13, window_bounds = array<i64: 1, 1, 128>}, {pipeline_mode = #tpu.pipeline_mode<synchronous>, transform_indices = @transform_14, window_bounds = array<i64: 1, 128>}, {pipeline_mode = #tpu.pipeline_mode<synchronous>, transform_indices = @transform_15, window_bounds = array<i64: 1, 128>}, {pipeline_mode = #tpu.pipeline_mode<synchronous>, transform_indices = @transform_16, window_bounds = array<i64: 128, 64>}, {transform_indices = @transform_17, window_bounds = array<i64: 1, 1, 64>}]} {
    %c0_i32 = arith.constant 0 : i32
    %0 = arith.cmpi eq, %arg1, %c0_i32 : i32
    %1 = arith.extui %0 : i1 to i32
    %c0_i32_0 = arith.constant 0 : i32
    %2 = arith.cmpi ne, %1, %c0_i32_0 : i32
    scf.if %2 {
      %c0_77 = arith.constant 0 : index
      %c0_78 = arith.constant 0 : index
      %c0_79 = arith.constant 0 : index
      %187 = vector.load %arg3[%c0_77, %c0_78, %c0_79] : memref<1x8x128xf32, #tpu.memory_space<vmem>>, vector<1x8x128xf32>
      %c0_80 = arith.constant 0 : index
      %c0_81 = arith.constant 0 : index
      %188 = vector.load %arg4[%c0_80, %c0_81] : memref<8x128xf32, #tpu.memory_space<vmem>>, vector<8x128xf32>
      %189 = vector.shape_cast %188 : vector<8x128xf32> to vector<1x8x128xf32>
      %190 = arith.addf %187, %189 : vector<1x8x128xf32>
      %c0_82 = arith.constant 0 : index
      %c0_83 = arith.constant 0 : index
      %c0_84 = arith.constant 0 : index
      %191 = vector.load %arg21[%c0_82, %c0_83, %c0_84] : memref<1x8x128xf32, #tpu.memory_space<vmem>>, vector<1x8x128xf32>
      tpu.vector_store %arg21[%c0_82, %c0_83, %c0_84], %190 {strides = array<i32>} : memref<1x8x128xf32, #tpu.memory_space<vmem>>, vector<1x8x128xf32>,
    } else {
    }
    %c0 = arith.constant 0 : index
    %c0_1 = arith.constant 0 : index
    %c0_2 = arith.constant 0 : index
    %3 = vector.load %arg21[%c0, %c0_1, %c0_2] : memref<1x8x128xf32, #tpu.memory_space<vmem>>, vector<1x8x128xf32>
    %4 = vector.shape_cast %3 : vector<1x8x128xf32> to vector<8x128xf32>
    %c0_3 = arith.constant 0 : index
    %c0_4 = arith.constant 0 : index
    %c0_5 = arith.constant 0 : index
    %5 = vector.load %arg5[%c0_3, %c0_4, %c0_5] : memref<1x1x128xf32, #tpu.memory_space<vmem>>, vector<1x1x128xf32>
    %6 = vector.shape_cast %5 : vector<1x1x128xf32> to vector<1x128xf32>
    %c0_6 = arith.constant 0 : index
    %c0_7 = arith.constant 0 : index
    %c0_8 = arith.constant 0 : index
    %7 = vector.load %arg6[%c0_6, %c0_7, %c0_8] : memref<1x1x128xf32, #tpu.memory_space<vmem>>, vector<1x1x128xf32>
    %8 = vector.shape_cast %7 : vector<1x1x128xf32> to vector<1x128xf32>
    %cst = arith.constant dense<0.000000e+00> : vector<8xf32>
    %9 = vector.multi_reduction <add>, %4, %cst [1] : vector<8x128xf32> to vector<8xf32>
    %10 = vector.shape_cast %9 : vector<8xf32> to vector<8x1xf32>
    %cst_9 = arith.constant 1.280000e+02 : f32
    %11 = vector.broadcast %cst_9 : f32 to vector<8x1xf32>
    %12 = arith.divf %10, %11 : vector<8x1xf32>
    %13 = vector.broadcast %12 : vector<8x1xf32> to vector<8x128xf32>
    %14 = arith.subf %4, %13 : vector<8x128xf32>
    %15 = arith.mulf %14, %14 : vector<8x128xf32>
    %cst_10 = arith.constant dense<0.000000e+00> : vector<8xf32>
    %16 = vector.multi_reduction <add>, %15, %cst_10 [1] : vector<8x128xf32> to vector<8xf32>
    %17 = vector.shape_cast %16 : vector<8xf32> to vector<8x1xf32>
    %cst_11 = arith.constant 1.280000e+02 : f32
    %18 = vector.broadcast %cst_11 : f32 to vector<8x1xf32>
    %19 = arith.divf %17, %18 : vector<8x1xf32>
    %20 = vector.broadcast %12 : vector<8x1xf32> to vector<8x128xf32>
    %21 = arith.subf %4, %20 : vector<8x128xf32>
    %cst_12 = arith.constant 9.99999974E-6 : f32
    %22 = vector.broadcast %cst_12 : f32 to vector<8x1xf32>
    %23 = arith.addf %19, %22 : vector<8x1xf32>
    %24 = math.rsqrt %23 : vector<8x1xf32>
    %25 = vector.broadcast %24 : vector<8x1xf32> to vector<8x128xf32>
    %26 = arith.mulf %21, %25 : vector<8x128xf32>
    %27 = vector.broadcast %6 : vector<1x128xf32> to vector<8x128xf32>
    %28 = arith.mulf %26, %27 : vector<8x128xf32>
    %29 = vector.broadcast %8 : vector<1x128xf32> to vector<8x128xf32>
    %30 = arith.addf %28, %29 : vector<8x128xf32>
    %c0_13 = arith.constant 0 : index
    %c0_14 = arith.constant 0 : index
    %c0_15 = arith.constant 0 : index
    %31 = vector.load %arg7[%c0_13, %c0_14, %c0_15] : memref<1x128x384xf32, #tpu.memory_space<vmem>>, vector<1x128x384xf32>
    %32 = vector.shape_cast %31 : vector<1x128x384xf32> to vector<128x384xf32>
    %cst_16 = arith.constant dense<0.000000e+00> : vector<8x384xf32>
    %33 = tpu.matmul %30, %32, %cst_16 {dimension_numbers = #tpu.dot_dimension_numbers<[1], [0], [0], [1], [0, 0, 1, 1], [], []>} : vector<8x128xf32>, vector<128x384xf32>, vector<8x384xf32> -> vector<8x384xf32>
    %c0_17 = arith.constant 0 : index
    %c0_18 = arith.constant 0 : index
    %c0_19 = arith.constant 0 : index
    %34 = vector.load %arg8[%c0_17, %c0_18, %c0_19] : memref<1x1x384xf32, #tpu.memory_space<vmem>>, vector<1x1x384xf32>
    %35 = vector.shape_cast %34 : vector<1x1x384xf32> to vector<1x384xf32>
    %36 = vector.broadcast %35 : vector<1x384xf32> to vector<8x384xf32>
    %37 = arith.addf %33, %36 : vector<8x384xf32>
    %38 = vector.extract_strided_slice %37 {offsets = [0, 0], sizes = [8, 128], strides = [1, 1]} : vector<8x384xf32> to vector<8x128xf32>
    %cst_20 = arith.constant 0.176776692 : f32
    %39 = vector.broadcast %cst_20 : f32 to vector<8x128xf32>
    %40 = arith.mulf %38, %39 : vector<8x128xf32>
    %41 = vector.shape_cast %40 : vector<8x128xf32> to vector<1x8x128xf32>
    %42 = vector.extract_strided_slice %37 {offsets = [0, 128], sizes = [8, 128], strides = [1, 1]} : vector<8x384xf32> to vector<8x128xf32>
    %43 = vector.shape_cast %42 : vector<8x128xf32> to vector<1x8x128xf32>
    %44 = vector.extract_strided_slice %37 {offsets = [0, 256], sizes = [8, 128], strides = [1, 1]} : vector<8x384xf32> to vector<8x128xf32>
    %45 = vector.shape_cast %44 : vector<8x128xf32> to vector<1x8x128xf32>
    %46 = tpu.iota {dimensions = array<i32: 0>} : vector<8x8xi32>
    %47 = tpu.iota {dimensions = array<i32: 1>} : vector<8x8xi32>
    %48 = arith.cmpi sle, %47, %46 : vector<8x8xi32>
    %c8_i32 = arith.constant 8 : i32
    %49 = vector.broadcast %c8_i32 : i32 to vector<8x8xi32>
    %50 = arith.cmpi slt, %47, %49 : vector<8x8xi32>
    %51 = arith.andi %48, %50 : vector<8x8xi1>
    %cst_21 = arith.constant 0.000000e+00 : f32
    %cst_22 = arith.constant -1.000000e+30 : f32
    %52 = vector.broadcast %cst_21 : f32 to vector<8x8xf32>
    %53 = vector.broadcast %cst_22 : f32 to vector<8x8xf32>
    %54 = arith.select %51, %52, %53 : vector<8x8xi1>, vector<8x8xf32>
    %55 = vector.extract_strided_slice %41 {offsets = [0, 0, 0], sizes = [1, 8, 32], strides = [1, 1, 1]} : vector<1x8x128xf32> to vector<1x8x32xf32>
    %56 = vector.extract_strided_slice %43 {offsets = [0, 0, 0], sizes = [1, 8, 32], strides = [1, 1, 1]} : vector<1x8x128xf32> to vector<1x8x32xf32>
    %57 = vector.extract_strided_slice %45 {offsets = [0, 0, 0], sizes = [1, 8, 32], strides = [1, 1, 1]} : vector<1x8x128xf32> to vector<1x8x32xf32>
    %cst_23 = arith.constant dense<0.000000e+00> : vector<1x8x8xf32>
    %58 = tpu.matmul %55, %56, %cst_23 {dimension_numbers = #tpu.dot_dimension_numbers<[2], [2], [1], [1], [0, 0, 0, 1, 1, 1], [0], [0]>} : vector<1x8x32xf32>, vector<1x8x32xf32>, vector<1x8x8xf32> -> vector<1x8x8xf32>
    %59 = vector.shape_cast %54 : vector<8x8xf32> to vector<1x8x8xf32>
    %60 = arith.addf %58, %59 : vector<1x8x8xf32>
    %cst_24 = arith.constant dense<0xFF800000> : vector<1x8xf32>
    %61 = vector.multi_reduction <maximumf>, %60, %cst_24 [2] : vector<1x8x8xf32> to vector<1x8xf32>
    %62 = vector.shape_cast %61 : vector<1x8xf32> to vector<1x8x1xf32>
    %63 = vector.broadcast %62 : vector<1x8x1xf32> to vector<1x8x8xf32>
    %64 = arith.subf %60, %63 : vector<1x8x8xf32>
    %65 = math.exp %64 : vector<1x8x8xf32>
    %cst_25 = arith.constant dense<0.000000e+00> : vector<1x8xf32>
    %66 = vector.multi_reduction <add>, %65, %cst_25 [2] : vector<1x8x8xf32> to vector<1x8xf32>
    %67 = vector.shape_cast %66 : vector<1x8xf32> to vector<1x8x1xf32>
    %68 = tpu.reciprocal %67 {approx = true} : vector<1x8x1xf32> -> vector<1x8x1xf32>
    %69 = vector.broadcast %68 : vector<1x8x1xf32> to vector<1x8x8xf32>
    %70 = arith.mulf %65, %69 : vector<1x8x8xf32>
    %cst_26 = arith.constant dense<0.000000e+00> : vector<1x8x32xf32>
    %71 = tpu.matmul %70, %57, %cst_26 {dimension_numbers = #tpu.dot_dimension_numbers<[2], [1], [1], [2], [0, 0, 0, 1, 1, 2], [0], [0]>} : vector<1x8x8xf32>, vector<1x8x32xf32>, vector<1x8x32xf32> -> vector<1x8x32xf32>
    %72 = vector.extract_strided_slice %41 {offsets = [0, 0, 32], sizes = [1, 8, 32], strides = [1, 1, 1]} : vector<1x8x128xf32> to vector<1x8x32xf32>
    %73 = vector.extract_strided_slice %43 {offsets = [0, 0, 32], sizes = [1, 8, 32], strides = [1, 1, 1]} : vector<1x8x128xf32> to vector<1x8x32xf32>
    %74 = vector.extract_strided_slice %45 {offsets = [0, 0, 32], sizes = [1, 8, 32], strides = [1, 1, 1]} : vector<1x8x128xf32> to vector<1x8x32xf32>
    %cst_27 = arith.constant dense<0.000000e+00> : vector<1x8x8xf32>
    %75 = tpu.matmul %72, %73, %cst_27 {dimension_numbers = #tpu.dot_dimension_numbers<[2], [2], [1], [1], [0, 0, 0, 1, 1, 1], [0], [0]>} : vector<1x8x32xf32>, vector<1x8x32xf32>, vector<1x8x8xf32> -> vector<1x8x8xf32>
    %76 = vector.shape_cast %54 : vector<8x8xf32> to vector<1x8x8xf32>
    %77 = arith.addf %75, %76 : vector<1x8x8xf32>
    %cst_28 = arith.constant dense<0xFF800000> : vector<1x8xf32>
    %78 = vector.multi_reduction <maximumf>, %77, %cst_28 [2] : vector<1x8x8xf32> to vector<1x8xf32>
    %79 = vector.shape_cast %78 : vector<1x8xf32> to vector<1x8x1xf32>
    %80 = vector.broadcast %79 : vector<1x8x1xf32> to vector<1x8x8xf32>
    %81 = arith.subf %77, %80 : vector<1x8x8xf32>
    %82 = math.exp %81 : vector<1x8x8xf32>
    %cst_29 = arith.constant dense<0.000000e+00> : vector<1x8xf32>
    %83 = vector.multi_reduction <add>, %82, %cst_29 [2] : vector<1x8x8xf32> to vector<1x8xf32>
    %84 = vector.shape_cast %83 : vector<1x8xf32> to vector<1x8x1xf32>
    %85 = tpu.reciprocal %84 {approx = true} : vector<1x8x1xf32> -> vector<1x8x1xf32>
    %86 = vector.broadcast %85 : vector<1x8x1xf32> to vector<1x8x8xf32>
    %87 = arith.mulf %82, %86 : vector<1x8x8xf32>
    %cst_30 = arith.constant dense<0.000000e+00> : vector<1x8x32xf32>
    %88 = tpu.matmul %87, %74, %cst_30 {dimension_numbers = #tpu.dot_dimension_numbers<[2], [1], [1], [2], [0, 0, 0, 1, 1, 2], [0], [0]>} : vector<1x8x8xf32>, vector<1x8x32xf32>, vector<1x8x32xf32> -> vector<1x8x32xf32>
    %89 = vector.extract_strided_slice %41 {offsets = [0, 0, 64], sizes = [1, 8, 32], strides = [1, 1, 1]} : vector<1x8x128xf32> to vector<1x8x32xf32>
    %90 = vector.extract_strided_slice %43 {offsets = [0, 0, 64], sizes = [1, 8, 32], strides = [1, 1, 1]} : vector<1x8x128xf32> to vector<1x8x32xf32>
    %91 = vector.extract_strided_slice %45 {offsets = [0, 0, 64], sizes = [1, 8, 32], strides = [1, 1, 1]} : vector<1x8x128xf32> to vector<1x8x32xf32>
    %cst_31 = arith.constant dense<0.000000e+00> : vector<1x8x8xf32>
    %92 = tpu.matmul %89, %90, %cst_31 {dimension_numbers = #tpu.dot_dimension_numbers<[2], [2], [1], [1], [0, 0, 0, 1, 1, 1], [0], [0]>} : vector<1x8x32xf32>, vector<1x8x32xf32>, vector<1x8x8xf32> -> vector<1x8x8xf32>
    %93 = vector.shape_cast %54 : vector<8x8xf32> to vector<1x8x8xf32>
    %94 = arith.addf %92, %93 : vector<1x8x8xf32>
    %cst_32 = arith.constant dense<0xFF800000> : vector<1x8xf32>
    %95 = vector.multi_reduction <maximumf>, %94, %cst_32 [2] : vector<1x8x8xf32> to vector<1x8xf32>
    %96 = vector.shape_cast %95 : vector<1x8xf32> to vector<1x8x1xf32>
    %97 = vector.broadcast %96 : vector<1x8x1xf32> to vector<1x8x8xf32>
    %98 = arith.subf %94, %97 : vector<1x8x8xf32>
    %99 = math.exp %98 : vector<1x8x8xf32>
    %cst_33 = arith.constant dense<0.000000e+00> : vector<1x8xf32>
    %100 = vector.multi_reduction <add>, %99, %cst_33 [2] : vector<1x8x8xf32> to vector<1x8xf32>
    %101 = vector.shape_cast %100 : vector<1x8xf32> to vector<1x8x1xf32>
    %102 = tpu.reciprocal %101 {approx = true} : vector<1x8x1xf32> -> vector<1x8x1xf32>
    %103 = vector.broadcast %102 : vector<1x8x1xf32> to vector<1x8x8xf32>
    %104 = arith.mulf %99, %103 : vector<1x8x8xf32>
    %cst_34 = arith.constant dense<0.000000e+00> : vector<1x8x32xf32>
    %105 = tpu.matmul %104, %91, %cst_34 {dimension_numbers = #tpu.dot_dimension_numbers<[2], [1], [1], [2], [0, 0, 0, 1, 1, 2], [0], [0]>} : vector<1x8x8xf32>, vector<1x8x32xf32>, vector<1x8x32xf32> -> vector<1x8x32xf32>
    %106 = vector.extract_strided_slice %41 {offsets = [0, 0, 96], sizes = [1, 8, 32], strides = [1, 1, 1]} : vector<1x8x128xf32> to vector<1x8x32xf32>
    %107 = vector.extract_strided_slice %43 {offsets = [0, 0, 96], sizes = [1, 8, 32], strides = [1, 1, 1]} : vector<1x8x128xf32> to vector<1x8x32xf32>
    %108 = vector.extract_strided_slice %45 {offsets = [0, 0, 96], sizes = [1, 8, 32], strides = [1, 1, 1]} : vector<1x8x128xf32> to vector<1x8x32xf32>
    %cst_35 = arith.constant dense<0.000000e+00> : vector<1x8x8xf32>
    %109 = tpu.matmul %106, %107, %cst_35 {dimension_numbers = #tpu.dot_dimension_numbers<[2], [2], [1], [1], [0, 0, 0, 1, 1, 1], [0], [0]>} : vector<1x8x32xf32>, vector<1x8x32xf32>, vector<1x8x8xf32> -> vector<1x8x8xf32>
    %110 = vector.shape_cast %54 : vector<8x8xf32> to vector<1x8x8xf32>
    %111 = arith.addf %109, %110 : vector<1x8x8xf32>
    %cst_36 = arith.constant dense<0xFF800000> : vector<1x8xf32>
    %112 = vector.multi_reduction <maximumf>, %111, %cst_36 [2] : vector<1x8x8xf32> to vector<1x8xf32>
    %113 = vector.shape_cast %112 : vector<1x8xf32> to vector<1x8x1xf32>
    %114 = vector.broadcast %113 : vector<1x8x1xf32> to vector<1x8x8xf32>
    %115 = arith.subf %111, %114 : vector<1x8x8xf32>
    %116 = math.exp %115 : vector<1x8x8xf32>
    %cst_37 = arith.constant dense<0.000000e+00> : vector<1x8xf32>
    %117 = vector.multi_reduction <add>, %116, %cst_37 [2] : vector<1x8x8xf32> to vector<1x8xf32>
    %118 = vector.shape_cast %117 : vector<1x8xf32> to vector<1x8x1xf32>
    %119 = tpu.reciprocal %118 {approx = true} : vector<1x8x1xf32> -> vector<1x8x1xf32>
    %120 = vector.broadcast %119 : vector<1x8x1xf32> to vector<1x8x8xf32>
    %121 = arith.mulf %116, %120 : vector<1x8x8xf32>
    %cst_38 = arith.constant dense<0.000000e+00> : vector<1x8x32xf32>
    %122 = tpu.matmul %121, %108, %cst_38 {dimension_numbers = #tpu.dot_dimension_numbers<[2], [1], [1], [2], [0, 0, 0, 1, 1, 2], [0], [0]>} : vector<1x8x8xf32>, vector<1x8x32xf32>, vector<1x8x32xf32> -> vector<1x8x32xf32>
    %123 = tpu.concatenate %71, %88, %105, %122 in 2 : vector<1x8x32xf32>, vector<1x8x32xf32>, vector<1x8x32xf32>, vector<1x8x32xf32> -> vector<1x8x128xf32>
    %124 = vector.shape_cast %123 : vector<1x8x128xf32> to vector<8x128xf32>
    %c0_39 = arith.constant 0 : index
    %c0_40 = arith.constant 0 : index
    %c0_41 = arith.constant 0 : index
    %125 = vector.load %arg9[%c0_39, %c0_40, %c0_41] : memref<1x128x128xf32, #tpu.memory_space<vmem>>, vector<1x128x128xf32>
    %126 = vector.shape_cast %125 : vector<1x128x128xf32> to vector<128x128xf32>
    %cst_42 = arith.constant dense<0.000000e+00> : vector<8x128xf32>
    %127 = tpu.matmul %124, %126, %cst_42 {dimension_numbers = #tpu.dot_dimension_numbers<[1], [0], [0], [1], [0, 0, 1, 1], [], []>} : vector<8x128xf32>, vector<128x128xf32>, vector<8x128xf32> -> vector<8x128xf32>
    %c0_43 = arith.constant 0 : index
    %c0_44 = arith.constant 0 : index
    %c0_45 = arith.constant 0 : index
    %128 = vector.load %arg10[%c0_43, %c0_44, %c0_45] : memref<1x1x128xf32, #tpu.memory_space<vmem>>, vector<1x1x128xf32>
    %129 = vector.shape_cast %128 : vector<1x1x128xf32> to vector<1x128xf32>
    %130 = vector.broadcast %129 : vector<1x128xf32> to vector<8x128xf32>
    %131 = arith.addf %127, %130 : vector<8x128xf32>
    %132 = arith.addf %4, %131 : vector<8x128xf32>
    %c0_46 = arith.constant 0 : index
    %c0_47 = arith.constant 0 : index
    %c0_48 = arith.constant 0 : index
    %133 = vector.load %arg11[%c0_46, %c0_47, %c0_48] : memref<1x1x128xf32, #tpu.memory_space<vmem>>, vector<1x1x128xf32>
    %134 = vector.shape_cast %133 : vector<1x1x128xf32> to vector<1x128xf32>
    %c0_49 = arith.constant 0 : index
    %c0_50 = arith.constant 0 : index
    %c0_51 = arith.constant 0 : index
    %135 = vector.load %arg12[%c0_49, %c0_50, %c0_51] : memref<1x1x128xf32, #tpu.memory_space<vmem>>, vector<1x1x128xf32>
    %136 = vector.shape_cast %135 : vector<1x1x128xf32> to vector<1x128xf32>
    %cst_52 = arith.constant dense<0.000000e+00> : vector<8xf32>
    %137 = vector.multi_reduction <add>, %132, %cst_52 [1] : vector<8x128xf32> to vector<8xf32>
    %138 = vector.shape_cast %137 : vector<8xf32> to vector<8x1xf32>
    %cst_53 = arith.constant 1.280000e+02 : f32
    %139 = vector.broadcast %cst_53 : f32 to vector<8x1xf32>
    %140 = arith.divf %138, %139 : vector<8x1xf32>
    %141 = vector.broadcast %140 : vector<8x1xf32> to vector<8x128xf32>
    %142 = arith.subf %132, %141 : vector<8x128xf32>
    %143 = arith.mulf %142, %142 : vector<8x128xf32>
    %cst_54 = arith.constant dense<0.000000e+00> : vector<8xf32>
    %144 = vector.multi_reduction <add>, %143, %cst_54 [1] : vector<8x128xf32> to vector<8xf32>
    %145 = vector.shape_cast %144 : vector<8xf32> to vector<8x1xf32>
    %cst_55 = arith.constant 1.280000e+02 : f32
    %146 = vector.broadcast %cst_55 : f32 to vector<8x1xf32>
    %147 = arith.divf %145, %146 : vector<8x1xf32>
    %148 = vector.broadcast %140 : vector<8x1xf32> to vector<8x128xf32>
    %149 = arith.subf %132, %148 : vector<8x128xf32>
    %cst_56 = arith.constant 9.99999974E-6 : f32
    %150 = vector.broadcast %cst_56 : f32 to vector<8x1xf32>
    %151 = arith.addf %147, %150 : vector<8x1xf32>
    %152 = math.rsqrt %151 : vector<8x1xf32>
    %153 = vector.broadcast %152 : vector<8x1xf32> to vector<8x128xf32>
    %154 = arith.mulf %149, %153 : vector<8x128xf32>
    %155 = vector.broadcast %134 : vector<1x128xf32> to vector<8x128xf32>
    %156 = arith.mulf %154, %155 : vector<8x128xf32>
    %157 = vector.broadcast %136 : vector<1x128xf32> to vector<8x128xf32>
    %158 = arith.addf %156, %157 : vector<8x128xf32>
    %c0_57 = arith.constant 0 : index
    %c0_58 = arith.constant 0 : index
    %c0_59 = arith.constant 0 : index
    %159 = vector.load %arg13[%c0_57, %c0_58, %c0_59] : memref<1x128x512xf32, #tpu.memory_space<vmem>>, vector<1x128x512xf32>
    %160 = vector.shape_cast %159 : vector<1x128x512xf32> to vector<128x512xf32>
    %cst_60 = arith.constant dense<0.000000e+00> : vector<8x512xf32>
    %161 = tpu.matmul %158, %160, %cst_60 {dimension_numbers = #tpu.dot_dimension_numbers<[1], [0], [0], [1], [0, 0, 1, 1], [], []>} : vector<8x128xf32>, vector<128x512xf32>, vector<8x512xf32> -> vector<8x512xf32>
    %c0_61 = arith.constant 0 : index
    %c0_62 = arith.constant 0 : index
    %c0_63 = arith.constant 0 : index
    %162 = vector.load %arg14[%c0_61, %c0_62, %c0_63] : memref<1x1x512xf32, #tpu.memory_space<vmem>>, vector<1x1x512xf32>
    %163 = vector.shape_cast %162 : vector<1x1x512xf32> to vector<1x512xf32>
    %164 = vector.broadcast %163 : vector<1x512xf32> to vector<8x512xf32>
    %165 = arith.addf %161, %164 : vector<8x512xf32>
    %cst_64 = arith.constant 1.702000e+00 : f32
    %166 = vector.broadcast %cst_64 : f32 to vector<8x512xf32>
    %167 = arith.mulf %166, %165 : vector<8x512xf32>
    %168 = arith.negf %167 : vector<8x512xf32>
    %169 = math.exp %168 : vector<8x512xf32>
    %cst_65 = arith.constant 1.000000e+00 : f32
    %170 = vector.broadcast %cst_65 : f32 to vector<8x512xf32>
    %171 = arith.addf %170, %169 : vector<8x512xf32>
    %172 = arith.divf %170, %171 : vector<8x512xf32>
    %173 = arith.mulf %165, %172 : vector<8x512xf32>
    %c0_66 = arith.constant 0 : index
    %c0_67 = arith.constant 0 : index
    %c0_68 = arith.constant 0 : index
    %174 = vector.load %arg15[%c0_66, %c0_67, %c0_68] : memref<1x512x128xf32, #tpu.memory_space<vmem>>, vector<1x512x128xf32>
    %175 = vector.shape_cast %174 : vector<1x512x128xf32> to vector<512x128xf32>
    %cst_69 = arith.constant dense<0.000000e+00> : vector<8x128xf32>
    %176 = tpu.matmul %173, %175, %cst_69 {dimension_numbers = #tpu.dot_dimension_numbers<[1], [0], [0], [1], [0, 0, 1, 1], [], []>} : vector<8x512xf32>, vector<512x128xf32>, vector<8x128xf32> -> vector<8x128xf32>
    %c0_70 = arith.constant 0 : index
    %c0_71 = arith.constant 0 : index
    %c0_72 = arith.constant 0 : index
    %177 = vector.load %arg16[%c0_70, %c0_71, %c0_72] : memref<1x1x128xf32, #tpu.memory_space<vmem>>, vector<1x1x128xf32>
    %178 = vector.shape_cast %177 : vector<1x1x128xf32> to vector<1x128xf32>
    %179 = vector.broadcast %178 : vector<1x128xf32> to vector<8x128xf32>
    %180 = arith.addf %176, %179 : vector<8x128xf32>
    %181 = arith.addf %132, %180 : vector<8x128xf32>
    %182 = vector.shape_cast %181 : vector<8x128xf32> to vector<1x8x128xf32>
    %c0_73 = arith.constant 0 : index
    %c0_74 = arith.constant 0 : index
    %c0_75 = arith.constant 0 : index
    %183 = vector.load %arg21[%c0_73, %c0_74, %c0_75] : memref<1x8x128xf32, #tpu.memory_space<vmem>>, vector<1x8x128xf32>
    tpu.vector_store %arg21[%c0_73, %c0_74, %c0_75], %182 {strides = array<i32>} : memref<1x8x128xf32, #tpu.memory_space<vmem>>, vector<1x8x128xf32>,
    %c1_i32 = arith.constant 1 : i32
    %184 = arith.cmpi eq, %arg1, %c1_i32 : i32
    %185 = arith.extui %184 : i1 to i32
    %c0_i32_76 = arith.constant 0 : i32
    %186 = arith.cmpi ne, %185, %c0_i32_76 : i32
    scf.if %186 {
      %c1_i32_77 = arith.constant 1 : i32
      %187 = arith.muli %arg0, %c1_i32_77 : i32
      %c0_i32_78 = arith.constant 0 : i32
      %188 = arith.addi %187, %c0_i32_78 : i32
      %189 = arith.index_cast %188 : i32 to index
      %190 = memref.load %arg2[%189] : memref<2xi32, #tpu.memory_space<smem>>
      %c0_79 = arith.constant 0 : index
      %191 = arith.index_cast %190 : i32 to index
      %c0_80 = arith.constant 0 : index
      %192 = vector.load %arg21[%c0_79, %191, %c0_80] : memref<1x8x128xf32, #tpu.memory_space<vmem>>, vector<1x1x128xf32>
      %193 = vector.shape_cast %192 : vector<1x1x128xf32> to vector<1x128xf32>
      %cst_81 = arith.constant dense<0.000000e+00> : vector<1xf32>
      %194 = vector.multi_reduction <add>, %193, %cst_81 [1] : vector<1x128xf32> to vector<1xf32>
      %195 = vector.shape_cast %194 : vector<1xf32> to vector<1x1xf32>
      %cst_82 = arith.constant 1.280000e+02 : f32
      %196 = vector.broadcast %cst_82 : f32 to vector<1x1xf32>
      %197 = arith.divf %195, %196 : vector<1x1xf32>
      %198 = vector.broadcast %197 : vector<1x1xf32> to vector<1x128xf32>
      %199 = arith.subf %193, %198 : vector<1x128xf32>
      %200 = arith.mulf %199, %199 : vector<1x128xf32>
      %cst_83 = arith.constant dense<0.000000e+00> : vector<1xf32>
      %201 = vector.multi_reduction <add>, %200, %cst_83 [1] : vector<1x128xf32> to vector<1xf32>
      %202 = vector.shape_cast %201 : vector<1xf32> to vector<1x1xf32>
      %cst_84 = arith.constant 1.280000e+02 : f32
      %203 = vector.broadcast %cst_84 : f32 to vector<1x1xf32>
      %204 = arith.divf %202, %203 : vector<1x1xf32>
      %205 = vector.broadcast %197 : vector<1x1xf32> to vector<1x128xf32>
      %206 = arith.subf %193, %205 : vector<1x128xf32>
      %cst_85 = arith.constant 9.99999974E-6 : f32
      %207 = vector.broadcast %cst_85 : f32 to vector<1x1xf32>
      %208 = arith.addf %204, %207 : vector<1x1xf32>
      %209 = math.rsqrt %208 : vector<1x1xf32>
      %210 = vector.broadcast %209 : vector<1x1xf32> to vector<1x128xf32>
      %211 = arith.mulf %206, %210 : vector<1x128xf32>
      %c0_86 = arith.constant 0 : index
      %c0_87 = arith.constant 0 : index
      %212 = vector.load %arg17[%c0_86, %c0_87] : memref<1x128xf32, #tpu.memory_space<vmem>>, vector<1x128xf32>
      %213 = arith.mulf %211, %212 : vector<1x128xf32>
      %c0_88 = arith.constant 0 : index
      %c0_89 = arith.constant 0 : index
      %214 = vector.load %arg18[%c0_88, %c0_89] : memref<1x128xf32, #tpu.memory_space<vmem>>, vector<1x128xf32>
      %215 = arith.addf %213, %214 : vector<1x128xf32>
      %c0_90 = arith.constant 0 : index
      %c0_91 = arith.constant 0 : index
      %216 = vector.load %arg19[%c0_90, %c0_91] : memref<128x64xf32, #tpu.memory_space<vmem>>, vector<128x64xf32>
      %cst_92 = arith.constant dense<0.000000e+00> : vector<1x64xf32>
      %217 = tpu.matmul %215, %216, %cst_92 {dimension_numbers = #tpu.dot_dimension_numbers<[1], [0], [0], [1], [0, 0, 1, 1], [], []>} : vector<1x128xf32>, vector<128x64xf32>, vector<1x64xf32> -> vector<1x64xf32>
      %c0_93 = arith.constant 0 : index
      %c0_94 = arith.constant 0 : index
      %c0_95 = arith.constant 0 : index
      %218 = vector.load %arg20[%c0_93, %c0_94, %c0_95] : memref<1x1x64xf32, #tpu.memory_space<vmem>>, vector<1x1x64xf32>
      %219 = vector.shape_cast %218 : vector<1x1x64xf32> to vector<1x64xf32>
      %220 = vector.shape_cast %217 : vector<1x64xf32> to vector<1x1x64xf32>
      tpu.vector_store %arg20[%c0_93, %c0_94, %c0_95], %220 {strides = array<i32>} : memref<1x1x64xf32, #tpu.memory_space<vmem>>, vector<1x1x64xf32>,
    } else {
    }
    return
  }
  func.func @transform_0(%arg0: i32, %arg1: i32, %arg2: memref<2xi32, #tpu.memory_space<smem>>) -> (i32, i32, i32) {
    %c0_i32 = arith.constant 0 : i32
    %c0_i32_0 = arith.constant 0 : i32
    %c0_i32_1 = arith.constant 0 : i32
    return %arg0, %c0_i32, %c0_i32_0 : i32, i32, i32
  }
  func.func @transform_1(%arg0: i32, %arg1: i32, %arg2: memref<2xi32, #tpu.memory_space<smem>>) -> (i32, i32) {
    %c0_i32 = arith.constant 0 : i32
    %c0_i32_0 = arith.constant 0 : i32
    %c0_i32_1 = arith.constant 0 : i32
    return %c0_i32, %c0_i32_0 : i32, i32
  }
  func.func @transform_2(%arg0: i32, %arg1: i32, %arg2: memref<2xi32, #tpu.memory_space<smem>>) -> (i32, i32, i32) {
    %c0_i32 = arith.constant 0 : i32
    %c0_i32_0 = arith.constant 0 : i32
    %c0_i32_1 = arith.constant 0 : i32
    return %arg1, %c0_i32, %c0_i32_0 : i32, i32, i32
  }
  func.func @transform_3(%arg0: i32, %arg1: i32, %arg2: memref<2xi32, #tpu.memory_space<smem>>) -> (i32, i32, i32) {
    %c0_i32 = arith.constant 0 : i32
    %c0_i32_0 = arith.constant 0 : i32
    %c0_i32_1 = arith.constant 0 : i32
    return %arg1, %c0_i32, %c0_i32_0 : i32, i32, i32
  }
  func.func @transform_4(%arg0: i32, %arg1: i32, %arg2: memref<2xi32, #tpu.memory_space<smem>>) -> (i32, i32, i32) {
    %c0_i32 = arith.constant 0 : i32
    %c0_i32_0 = arith.constant 0 : i32
    %c0_i32_1 = arith.constant 0 : i32
    return %arg1, %c0_i32, %c0_i32_0 : i32, i32, i32
  }
  func.func @transform_5(%arg0: i32, %arg1: i32, %arg2: memref<2xi32, #tpu.memory_space<smem>>) -> (i32, i32, i32) {
    %c0_i32 = arith.constant 0 : i32
    %c0_i32_0 = arith.constant 0 : i32
    %c0_i32_1 = arith.constant 0 : i32
    return %arg1, %c0_i32, %c0_i32_0 : i32, i32, i32
  }
  func.func @transform_6(%arg0: i32, %arg1: i32, %arg2: memref<2xi32, #tpu.memory_space<smem>>) -> (i32, i32, i32) {
    %c0_i32 = arith.constant 0 : i32
    %c0_i32_0 = arith.constant 0 : i32
    %c0_i32_1 = arith.constant 0 : i32
    return %arg1, %c0_i32, %c0_i32_0 : i32, i32, i32
  }
  func.func @transform_7(%arg0: i32, %arg1: i32, %arg2: memref<2xi32, #tpu.memory_space<smem>>) -> (i32, i32, i32) {
    %c0_i32 = arith.constant 0 : i32
    %c0_i32_0 = arith.constant 0 : i32
    %c0_i32_1 = arith.constant 0 : i32
    return %arg1, %c0_i32, %c0_i32_0 : i32, i32, i32
  }
  func.func @transform_8(%arg0: i32, %arg1: i32, %arg2: memref<2xi32, #tpu.memory_space<smem>>) -> (i32, i32, i32) {
    %c0_i32 = arith.constant 0 : i32
    %c0_i32_0 = arith.constant 0 : i32
    %c0_i32_1 = arith.constant 0 : i32
    return %arg1, %c0_i32, %c0_i32_0 : i32, i32, i32
  }
  func.func @transform_9(%arg0: i32, %arg1: i32, %arg2: memref<2xi32, #tpu.memory_space<smem>>) -> (i32, i32, i32) {
    %c0_i32 = arith.constant 0 : i32
    %c0_i32_0 = arith.constant 0 : i32
    %c0_i32_1 = arith.constant 0 : i32
    return %arg1, %c0_i32, %c0_i32_0 : i32, i32, i32
  }
  func.func @transform_10(%arg0: i32, %arg1: i32, %arg2: memref<2xi32, #tpu.memory_space<smem>>) -> (i32, i32, i32) {
    %c0_i32 = arith.constant 0 : i32
    %c0_i32_0 = arith.constant 0 : i32
    %c0_i32_1 = arith.constant 0 : i32
    return %arg1, %c0_i32, %c0_i32_0 : i32, i32, i32
  }
  func.func @transform_11(%arg0: i32, %arg1: i32, %arg2: memref<2xi32, #tpu.memory_space<smem>>) -> (i32, i32, i32) {
    %c0_i32 = arith.constant 0 : i32
    %c0_i32_0 = arith.constant 0 : i32
    %c0_i32_1 = arith.constant 0 : i32
    return %arg1, %c0_i32, %c0_i32_0 : i32, i32, i32
  }
  func.func @transform_12(%arg0: i32, %arg1: i32, %arg2: memref<2xi32, #tpu.memory_space<smem>>) -> (i32, i32, i32) {
    %c0_i32 = arith.constant 0 : i32
    %c0_i32_0 = arith.constant 0 : i32
    %c0_i32_1 = arith.constant 0 : i32
    return %arg1, %c0_i32, %c0_i32_0 : i32, i32, i32
  }
  func.func @transform_13(%arg0: i32, %arg1: i32, %arg2: memref<2xi32, #tpu.memory_space<smem>>) -> (i32, i32, i32) {
    %c0_i32 = arith.constant 0 : i32
    %c0_i32_0 = arith.constant 0 : i32
    %c0_i32_1 = arith.constant 0 : i32
    return %arg1, %c0_i32, %c0_i32_0 : i32, i32, i32
  }
  func.func @transform_14(%arg0: i32, %arg1: i32, %arg2: memref<2xi32, #tpu.memory_space<smem>>) -> (i32, i32) {
    %c0_i32 = arith.constant 0 : i32
    %c0_i32_0 = arith.constant 0 : i32
    %c0_i32_1 = arith.constant 0 : i32
    return %c0_i32, %c0_i32_0 : i32, i32
  }
  func.func @transform_15(%arg0: i32, %arg1: i32, %arg2: memref<2xi32, #tpu.memory_space<smem>>) -> (i32, i32) {
    %c0_i32 = arith.constant 0 : i32
    %c0_i32_0 = arith.constant 0 : i32
    %c0_i32_1 = arith.constant 0 : i32
    return %c0_i32, %c0_i32_0 : i32, i32
  }
  func.func @transform_16(%arg0: i32, %arg1: i32, %arg2: memref<2xi32, #tpu.memory_space<smem>>) -> (i32, i32) {
    %c0_i32 = arith.constant 0 : i32
    %c0_i32_0 = arith.constant 0 : i32
    %c0_i32_1 = arith.constant 0 : i32
    return %c0_i32, %c0_i32_0 : i32, i32
  }
  func.func @transform_17(%arg0: i32, %arg1: i32, %arg2: memref<2xi32, #tpu.memory_space<smem>>) -> (i32, i32, i32) {
    %c0_i32 = arith.constant 0 : i32
    %c0_i32_0 = arith.constant 0 : i32
    %c0_i32_1 = arith.constant 0 : i32
    return %arg0, %c0_i32, %c0_i32_0 : i32, i32, i32
  }
}

</mosaic_0001>

<bundles_post_ra>
// kernel: text_encoder_forward.1
= control target key start
LH: loop header
LB: loop body
LE: loop exit
PB: predicated region body
PF: predicated region fallthrough
CT: control target
= control target key end

     0   :  { %s4574_s0 = inlined_call_operand.vmem [shape: s32[2], index: 0, kind: input, shape index: {}]   ;;  %s4575_s1 = inlined_call_operand.vmem [shape: f32[2,8,128], index: 1, kind: input, shape index: {}]   ;;  %s4576_s2 = inlined_call_operand.vmem [shape: f32[8,128], index: 2, kind: input, shape index: {}]   ;;  %s4577_s3 = inlined_call_operand.vmem [shape: f32[2,1,128], index: 3, kind: input, shape index: {}]   ;;  %s4578_s4 = inlined_call_operand.vmem [shape: f32[2,1,128], index: 4, kind: input, shape index: {}]   ;;  %s4579_s5 = inlined_call_operand.hbm [shape: f32[2,128,384], index: 5, kind: input, shape index: {}]   ;;  %s4580_s6 = inlined_call_operand.vmem [shape: f32[2,1,384], index: 6, kind: input, shape index: {}]   ;;  %s4581_s7 = inlined_call_operand.vmem [shape: f32[2,128,128], index: 7, kind: input, shape index: {}]   ;;  %s4582_s8 = inlined_call_operand.vmem [shape: f32[2,1,128], index: 8, kind: input, shape index: {}]   ;;  %s4583_s9 = inlined_call_operand.vmem [shape: f32[2,1,128], index: 9, kind: input, shape index: {}]   ;;  %s4584_s10 = inlined_call_operand.vmem [shape: f32[2,1,128], index: 10, kind: input, shape index: {}]   ;;  %s4585_s11 = inlined_call_operand.hbm [shape: f32[2,128,512], index: 11, kind: input, shape index: {}]   ;;  %s4586_s12 = inlined_call_operand.vmem [shape: f32[2,1,512], index: 12, kind: input, shape index: {}]   ;;  %s4587_s13 = inlined_call_operand.hbm [shape: f32[2,512,128], index: 13, kind: input, shape index: {}]   ;;  %s4588_s14 = inlined_call_operand.vmem [shape: f32[2,1,128], index: 14, kind: input, shape index: {}]   ;;  %s4589_s15 = inlined_call_operand.vmem [shape: f32[1,128], index: 15, kind: input, shape index: {}]   ;;  %s4590_s16 = inlined_call_operand.vmem [shape: f32[1,128], index: 16, kind: input, shape index: {}]   ;;  %s4591_s17 = inlined_call_operand.vmem [shape: f32[128,64], index: 17, kind: input, shape index: {}]   ;;  %s4592_s18 = inlined_call_operand.hbm [shape: f32[2,1,64], index: 18, kind: output, shape index: {}]  }
   0x1   :  { %4614 = sst [smem:[#allocation31_spill]] %s4574_s0 }
   0x2   :  { %4615 = sst [smem:[#allocation32_spill]] %s4575_s1  ;;  %s4631_s29 = sld [smem:[#allocation31_spill]] }
   0x3   :  { %4616 = sst [smem:[#allocation33_spill]] %s4576_s2 }
   0x4   :  { %4617 = sst [smem:[#allocation34_spill]] %s4579_s5 }
   0x5   :  { %4618 = sst [smem:[#allocation35_spill]] %s4580_s6 }
   0x6   :  { %4619 = sst [smem:[#allocation36_spill]] %s4581_s7 }
   0x7   :  { %4620 = sst [smem:[#allocation37_spill]] %s4582_s8 }
   0x8   :  { %4621 = sst [smem:[#allocation38_spill]] %s4583_s9 }
   0x9   :  { %4622 = sst [smem:[#allocation39_spill]] %s4584_s10 }
   0xa   :  { %4623 = sst [smem:[#allocation40_spill]] %s4585_s11 }
   0xb   :  { %4624 = sst [smem:[#allocation41_spill]] %s4586_s12  ;;  %s23_s12 = sshll.u32 %s4631_s29, 4  ;;  %s24_s12 = int_to_ptr.vmem [resolvable:$true] %s23_s12 }
   0xc   :  { %4625 = sst [smem:[#allocation42_spill]] %s4587_s13  ;;  %s3420_s30 = scalar_lea.vmem %s24_s12, 16 }
   0xd   :  { %4626 = sst [smem:[#allocation43_spill]] %s4588_s14  ;;  %p3421_p0 = scmp.ne.s32.totalorder %s24_s12, %s3420_s30 }
   0xe   :  { %4627 = sst [smem:[#allocation44_spill]] %s4589_s15  ;;  %p3425_p1 = scmp.lt.s32.totalorder %s24_s12, %s24_s12 }
   0xf   :  { %4628 = sst [smem:[#allocation45_spill]] %s4590_s16  ;;  %p3426_p2 = scmp.lt.s32.totalorder %s3420_s30, %s3420_s30 }
  0x10   :  { %4629 = sst [smem:[#allocation46_spill]] %s4591_s17 }
  0x11   :  { %4630 = sst [smem:[#allocation47_spill]] %s4592_s18  ;;  %p3427_p3 = por %p3426_p2, %p3425_p1 }
  0x13   :  { %p3428_p4 = pnand %p3427_p3, %p3421_p0 }
  0x15   :  { %3431 = shalt.err (!%p3428_p4)  }
  0x16   :  { %s3652_s0 = smov [#allocation4]  }
  0x17   :  { %26 = dma.vmem_to_smem %s24_s12, 16, %s3652_s0, [#allocation3] }
  0x18   :  { %3594 = dma.done.wait [#allocation3], 16 }
  0x19   :  { %3595 = vsyncadd [#allocation3], 4294967280 }
  0x1a   :  { %28 = sfence }
  0x1b   :  { %29 = vsyncpa [#allocation6], 0 }
  0x1c   :  { %31 = vsyncpa [#allocation6 + $0x1], 0 }
  0x1d   :  { %32 = vsyncpa [#allocation9], 0 }
  0x1e   :  { %34 = vsyncpa [#allocation9 + $0x1], 0 }
  0x1f   :  { %35 = vsyncpa [#allocation7], 0 }
  0x20   :  { %37 = vsyncpa [#allocation7 + $0x1], 0  ;;  %s3771_s19 = smov 0   ;;  %s3773_s1 = smov 0  }
  0x21   :  { %s3775_s20 = smov 0   ;;  %s3777_s21 = smov 0  }
  0x22   :  { %s3779_s22 = smov 0   ;;  %s3781_s12 = smov 0  }
  0x23   :  { %s3783_s2 = smov 0   ;;  %s3785_s23 = smov 0  }
  0x24   :  { %s3787_s24 = smov 0   ;;  %s3789_s25 = smov 0  }
  0x25   :  { %s3791_s26 = smov 0  }
  0x26 LB: > { %4632 = sst [smem:[#allocation16_spill]] %s3610_s19  ;;  %s3825_s27 = sadd.s32 4294967295, %s3650_s26   ;;  %s3650_s26 = sphi %s3791_s26, %s43_s26   ;;  %s3646_s25 = sphi %s3789_s25, %s4701_s25   ;;  %s3642_s24 = sphi %s3787_s24, %s4700_s24   ;;  %s3638_s23 = sphi %s3785_s23, %s4699_s23   ;;  %s3634_s2 = sphi %s3783_s2, %s4698_s2   ;;  %s3630_s12 = sphi %s3781_s12, %s4697_s12   ;;  %s3626_s22 = sphi %s3779_s22, %s4696_s22   ;;  %s3622_s21 = sphi %s3777_s21, %s4695_s21   ;;  %s3618_s20 = sphi %s3775_s20, %s4694_s20   ;;  %s3614_s1 = sphi %s3773_s1, %s4703_s1   ;;  %s3610_s19 = sphi %s3771_s19, %s4702_s19  }
  0x27   : > { %4633 = sst [smem:[#allocation17_spill]] %s3618_s20  ;;  %s2688_s28 = sadd.s32 4294967294, %s3650_s26  }
  0x28   : > { %4634 = sst [smem:[#allocation18_spill]] %s3626_s22  ;;  %s52_s29 = sadd.s32 1, %s3642_s24 }
  0x29   : > { %4635 = sst [smem:[#allocation19_spill]] %s3630_s12  ;;  %s55_s30 = sadd.s32 1, %s3646_s25 }
  0x2a   : > { %4636 = sst [smem:[#allocation20_spill]] %s3638_s23  ;;  %p53_p5 = scmp.ge.s32.totalorder %s52_s29, 2 }
  0x2b   : > { %4637 = sst [smem:[#allocation21_spill]] %s3642_s24  ;;  %s161_s0 = sadd.s32 1, %s3630_s12 }
  0x2c   : > { %4638 = sst [smem:[#allocation22_spill]] %s3646_s25  ;;  %p168_p6 = scmp.ne.s32.totalorder %s3630_s12, %s3626_s22 }
  0x2d   : > { %4639 = sst [smem:[#allocation23_spill]] %s3650_s26  ;;  %p169_p7 = scmp.eq.s32.totalorder %s3650_s26, 0 }
  0x2e   : > { %s4705_s29 = smov (%p53_p5, %s52_s29), 0  ;;  %s4707_s30 = smov (!%p53_p5, %s55_s30), %s3646_s25 }
  0x2f   : > { %4640 = sst [smem:[#allocation24_spill]] %s4705_s29  ;;  %s158_s18 = ssub.s32 %s3642_s24, %s4705_s29 }
  0x30   : > { %p3839_p8 = por %p169_p7, %p168_p6  ;;  %p57_p9 = scmp.ge.s32.totalorder %s4707_s30, 2 }
  0x31   : > { %p159_p10 = scmp.eq.s32.totalorder %s158_s18, 0  ;;  %p174_p11 = scmp.ne.s32.totalorder %s3626_s22, %s3622_s21 }
  0x32   : > { %p175_p12 = scmp.eq.s32.totalorder %s3825_s27, 0  ;;  %s4709_s30 = smov (%p57_p9, %s4707_s30), 0 }
  0x33   : > { %4642 = sst [smem:[#allocation25_spill]] %s4709_s30  ;;  %s481_s17 = ssub.s32 %s3646_s25, %s4709_s30 }
  0x34   : > { %s3848_s15 = scalar_select %p159_p10, %s3630_s12, %s161_s0  }
  0x35   : > { %p3850_p13 = por %p175_p12, %p174_p11  ;;  %p482_p0 = scmp.eq.s32.totalorder %s481_s17, 0 }
  0x36   : > { %4643 = sst [smem:[#allocation26_spill]] %s3848_s15  ;;  %s484_s14 = sadd.s32 1, %s3618_s20 }
  0x37   : > { %s4644_s29 = scalar_select %p3850_p13, 1, 0 }
  0x38   : > { %p494_p1 = scmp.ne.s32.totalorder %s3618_s20, %s3614_s1  ;;  %p495_p2 = scmp.eq.s32.totalorder %s3825_s27, 3 }
  0x39   : > { %s3861_s18 = scalar_select %p482_p0, %s3618_s20, %s484_s14  }
  0x3a   : > { %p3863_p3 = por %p495_p2, %p494_p1  ;;  %p500_p4 = scmp.ne.s32.totalorder %s3614_s1, %s3610_s19 }
  0x3b   : > { %4645 = sst [smem:[#allocation27_spill]] %s3861_s18  ;;  %p501_p5 = scmp.eq.s32.totalorder %s2688_s28, 3 }
  0x3c   : > { %s4646_s21 = scalar_select %p3863_p3, 1, 0 }
  0x3d   : > { %p3275_p6 = scmp.lt.s32.totalorder %s3650_s26, 4  ;;  %s3871_s0 = sand.u32 1, %s3630_s12  }
  0x3e   : > { %4647 = sst [smem:[#allocation28_spill]] %s4646_s21  ;;  %p3873_p7 = por %p501_p5, %p500_p4 }
  0x3f   : > { %s606_s17 = sand.u32 1, %s3650_s26   ;;  %p3880_p9 = pnand %p3275_p6, %p3839_p8 }
  0x40   : > { %s4648_s30 = scalar_select %p3873_p7, 1, 0 }
  0x41   : > { %s4604_s25 = sshll.u32 %s3871_s0, 9  ;;  %s4605_s15 = sshll.u32 %s3642_s24, 13 }
  0x42   : > { %4649 = sst [smem:[#allocation29_spill]] %s4648_s30  ;;  %s4651_s11 = sld [smem:[#allocation40_spill]] }
  0x43   : > { %s610_s20 = scalar_lea.vmem [#allocation8], %s4604_s25  ;;  %s3897_s30 = scalar_lea.sflag [#allocation9], %s606_s17 }
  0x44   : > { %s617_s16 = sshll.u32 %s610_s20, 4  ;;  %p3903_p10 = pneg %p3880_p9  ;;  %s3895_s16 = int_to_ptr.vmem [resolvable:$true] %s617_s16 }
  0x48   : > { %s3891_s12 = scalar_lea.hbm %s4651_s11, %s4605_s15  ;;  %s3437_s25 = scalar_lea.hbm %s4651_s11, 16384 }
  0x49   : > { %s3432_s19 = scalar_lea.hbm %s3891_s12, 8192  ;;  %p3438_p0 = scmp.lt.u32.totalorder %s3891_s12, %s4651_s11 }
  0x4a   : > { %p3433_p8 = scmp.ne.s32.totalorder %s3891_s12, %s3432_s19  ;;  %p3439_p1 = scmp.lt.u32.totalorder %s3437_s25, %s3432_s19 }
  0x4b   : > { %p3441_p4 = scmp.lt.u32.totalorder %s3432_s19, %s3891_s12 }
  0x4c   : > { %p3435_p11 = pnand %p3903_p10, %p3433_p8  ;;  %p3440_p2 = por %p3439_p1, %p3438_p0 }
  0x4e   : > { %p3436_p12 = pneg %p3435_p11  ;;  %p3442_p5 = por %p3441_p4, %p3440_p2 }
  0x50   : > { %p3443_p6 = pnand %p3442_p5, %p3436_p12 }
  0x52   : > { %3446 = shalt.err (!%p3443_p6)
}
  0x53   : > { %s3447_s17 = scalar_lea.vmem %s3895_s16, 8192  ;;  %s3653_s18 = smov [#allocation8]  }
  0x54   : > { %p3448_p8 = scmp.ne.s32.totalorder %s3895_s16, %s3447_s17  ;;  %s3452_s28 = sshll.u32 %s3653_s18, 4  ;;  %s3453_s28 = int_to_ptr.vmem [resolvable:$false] %s3452_s28 }
  0x55   : > { %s3454_s15 = scalar_lea.vmem %s3453_s28, 16384  ;;  %p3455_p3 = scmp.lt.s32.totalorder %s3895_s16, %s3453_s28 }
  0x56   : > { %p3450_p11 = pnand %p3448_p8, %p3903_p10  ;;  %p3456_p13 = scmp.lt.s32.totalorder %s3454_s15, %s3447_s17 }
  0x58   : > { %p3451_p7 = pneg %p3450_p11  ;;  %p3457_p0 = por %p3456_p13, %p3455_p3 }
  0x5a   : > { %p3458_p1 = pnand %p3457_p0, %p3451_p7 }
  0x5c   : > { %3461 = shalt.err (!%p3458_p1)
}
  0x5d   : > { %s3654_s19 = smov 512   ;;  %s3655_s25 = smov 32  }
  0x5e   : > { %3267 = dma.hbm_to_vmem [thread:$0]  (!%p3880_p9), %s3891_s12, 8192, %s3895_s16, %s3897_s30, %s3654_s19, %s3654_s19, %s3655_s25  }
  0x5f   : > { %s4653_s20 = sshll.u32 %s3642_s24, 13  ;;  %s4654_s13 = sld [smem:[#allocation42_spill]] }
  0x60   : > { %s4655_s15 = sshll.u32 %s3871_s0, 9  ;;  %p2698_p13 = scmp.ge.s32.totalorder %s3650_s26, 1 }
  0x61   : > { %s638_s11 = scalar_lea.vmem [#allocation10], %s4655_s15  ;;  %p659_p3 = scmp.lt.s32.totalorder %s3650_s26, 5 }
  0x62   : > { %s645_s10 = sshll.u32 %s638_s11, 4  ;;  %s3249_s7 = smul.u32 384, %s3871_s0  ;;  %s3936_s10 = int_to_ptr.vmem [resolvable:$true] %s645_s10 }
  0x63   : > { %p3940_p7 = pnand %p2698_p13, %p659_p3  ;;  %s3250_s12 = smul.u32 6144, %s3642_s24 }
  0x64   : > { %s4657_s5 = sld [smem:[#allocation34_spill]]  ;;  %s556_s11 = scalar_lea.vmem [#allocation5], %s3249_s7 }
  0x65   : > { %s3932_s28 = scalar_lea.hbm %s4654_s13, %s4653_s20  ;;  %s563_s20 = sshll.u32 %s556_s11, 4  ;;  %s3951_s20 = int_to_ptr.vmem [resolvable:$true] %s563_s20 }
  0x66   : > { %s4656_s9 = scalar_select %p3940_p7, 1, 0 }
  0x67   : > { %s553_s17 = scalar_lea.sflag [#allocation6], %s3871_s0 }
  0x6a   : > { %s3949_s25 = scalar_lea.hbm %s4657_s5, %s3250_s12  ;;  %s3467_s16 = scalar_lea.hbm %s4657_s5, 12288 }
  0x6b   : > { %s3462_s18 = scalar_lea.hbm %s3949_s25, 6144  ;;  %p3468_p5 = scmp.lt.u32.totalorder %s3949_s25, %s4657_s5 }
  0x6c   : > { %p3463_p12 = scmp.ne.s32.totalorder %s3949_s25, %s3462_s18  ;;  %p3469_p6 = scmp.lt.u32.totalorder %s3467_s16, %s3462_s18 }
  0x6d   : > { %p3471_p11 = scmp.lt.u32.totalorder %s3462_s18, %s3949_s25 }
  0x6e   : > { %p3465_p2 = pnand %p3463_p12, %p3903_p10  ;;  %p3470_p8 = por %p3469_p6, %p3468_p5 }
  0x70   : > { %p3466_p4 = pneg %p3465_p2  ;;  %p3472_p0 = por %p3471_p11, %p3470_p8 }
  0x72   : > { %p3473_p1 = pnand %p3472_p0, %p3466_p4 }
  0x74   : > { %3476 = shalt.err (!%p3473_p1)
}
  0x75   : > { %s3477_s7 = scalar_lea.vmem %s3951_s20, 6144  ;;  %s3656_s24 = smov [#allocation5]  }
  0x76   : > { %p3478_p13 = scmp.ne.s32.totalorder %s3951_s20, %s3477_s7  ;;  %s3482_s11 = sshll.u32 %s3656_s24, 4  ;;  %s3483_s11 = int_to_ptr.vmem [resolvable:$false] %s3482_s11 }
  0x77   : > { %s3484_s15 = scalar_lea.vmem %s3483_s11, 12288  ;;  %p3485_p2 = scmp.lt.s32.totalorder %s3951_s20, %s3483_s11 }
  0x78   : > { %p3480_p3 = pnand %p3478_p13, %p3903_p10  ;;  %p3486_p7 = scmp.lt.s32.totalorder %s3484_s15, %s3477_s7 }
  0x7a   : > { %p3481_p12 = pneg %p3480_p3  ;;  %p3487_p5 = por %p3486_p7, %p3485_p2 }
  0x7c   : > { %p3488_p6 = pnand %p3487_p5, %p3481_p12 }
  0x7e   : > { %3491 = shalt.err (!%p3488_p6)
}
  0x7f   : > { %s3657_s18 = smov 384   ;;  %s3658_s16 = smov 24  }
  0x80   : > { %3264 = dma.hbm_to_vmem [thread:$0]  (!%p3880_p9), %s3949_s25, 6144, %s3951_s20, %s553_s17, %s3657_s18, %s3657_s18, %s3658_s16  }
  0x81   : > { %s3492_s12 = scalar_lea.hbm %s3932_s28, 8192  ;;  %s3497_s24 = scalar_lea.hbm %s4654_s13, 16384 }
  0x82   : > { %p3493_p4 = scmp.ne.s32.totalorder %s3932_s28, %s3492_s12  ;;  %p3498_p11 = scmp.lt.u32.totalorder %s3932_s28, %s4654_s13 }
  0x83   : > { %p3499_p0 = scmp.lt.u32.totalorder %s3497_s24, %s3492_s12  ;;  %p3501_p13 = scmp.lt.u32.totalorder %s3492_s12, %s3932_s28 }
  0x84   : > { %p3495_p7 = pnand %p3493_p4, %p3903_p10 }
  0x85   : > { %p3500_p1 = por %p3499_p0, %p3498_p11 }
  0x86   : > { %p3496_p8 = pneg %p3495_p7 }
  0x87   : > { %p3502_p3 = por %p3501_p13, %p3500_p1 }
  0x89   : > { %p3503_p12 = pnand %p3502_p3, %p3496_p8 }
  0x8b   : > { %3506 = shalt.err (!%p3503_p12)
}
  0x8c   : > { %s3507_s0 = scalar_lea.vmem %s3936_s10, 8192  ;;  %s3659_s25 = smov [#allocation10]  }
  0x8d   : > { %p3508_p2 = scmp.ne.s32.totalorder %s3936_s10, %s3507_s0  ;;  %s3512_s20 = sshll.u32 %s3659_s25, 4  ;;  %s3513_s20 = int_to_ptr.vmem [resolvable:$false] %s3512_s20 }
  0x8e   : > { %s3514_s17 = scalar_lea.vmem %s3513_s20, 16384  ;;  %p3515_p4 = scmp.lt.s32.totalorder %s3936_s10, %s3513_s20 }
  0x8f   : > { %p3510_p5 = pnand %p3508_p2, %p3903_p10  ;;  %p3516_p7 = scmp.lt.s32.totalorder %s3514_s17, %s3507_s0 }
  0x91   : > { %p3511_p6 = pneg %p3510_p5  ;;  %p3517_p11 = por %p3516_p7, %p3515_p4 }
  0x93   : > { %p3518_p0 = pnand %p3517_p11, %p3511_p6 }
  0x95   : > { %3521 = shalt.err (!%p3518_p0)
}
  0x96   : > { %s3660_s18 = smov 128   ;;  %s3661_s16 = smov 8  }
  0x97   : > { %3270 = dma.hbm_to_vmem [thread:$0]  (!%p3880_p9), %s3932_s28, 8192, %s3936_s10, %s3897_s30, %s3660_s18, %s3660_s18, %s3661_s16  }
  0x98   : > { %p4658_p10 = scmp.ne.s32.totalorder %s4656_s9, 0 }
  0x9a   : > { %663 = sbr.rel (%p4658_p10) target bundleno = 4738 (0x1282), region = 88 }
  0xa1   : > { %s4002_s21 = sand.u32 1, %s3626_s22   ;;  %p4659_p8 = scmp.ne.s32.totalorder %s4644_s29, 0 }
  0xa2   : > { %s3251_s12 = smul.u32 384, %s4002_s21  ;;  %s666_s19 = scalar_lea.sflag [#allocation6], %s4002_s21 }
  0xa4   : > { %s4006_s7 = scalar_lea.vmem [#allocation5], %s3251_s12 }
  0xa5   : > { %3597 = dma.done.wait (%p4659_p8), %s666_s19, 6144  }
  0xa6   : > { %3599 = vsyncadd (%p4659_p8), %s666_s19, 4294961152  ;;  %s674_s9 = sand.u32 1, %s3825_s27   ;;  %s2699_s10 = sshll.u32 %s4002_s21, 9 }
  0xa7   : > { %s675_s30 = scalar_lea.sflag [#allocation9], %s674_s9  ;;  %s4014_s14 = scalar_lea.vmem [#allocation8], %s2699_s10 }
  0xa8   : > { %4660 = sst [smem:[#allocation30_spill]] %s4014_s14 }
  0xa9   : > { %3601 = dma.done.wait (%p4659_p8), %s675_s30, 16384  }
  0xaa   : > { %3603 = vsyncadd (%p4659_p8), %s675_s30, 4294950912  ;;  %p782_p9 = scmp.lt.s32.totalorder %s3638_s23, 1  ;;  %p786_p1 = scmp.lt.s32.totalorder %s3634_s2, 1 }
  0xab   : > { %s4661_s0 = sld [smem:[#allocation32_spill]]  ;;  %s4663_s6 = sld [smem:[#allocation35_spill]] }
  0xac   : > { %s783_s24 = scalar_select %p782_p9, %s3638_s23, 1 }
  0xad   : > { %s4025_s11 = scalar_select %p786_p1, %s3634_s2, 1 }
  0xae   : > { %s2701_s27 = sshll.u32 %s783_s24, 3  ;;  %s4664_s15 = sld [smem:[#allocation36_spill]] }
  0xaf   : > { %s3252_s19 = smul.u32 3, %s4025_s11  ;;  %s2734_s9 = sshll.u32 %s4025_s11, 7 }
  0xb0   : > { %s4665_s16 = sld [smem:[#allocation38_spill]]  ;;  %s4666_s26 = sld [smem:[#allocation39_spill]] }
  0xb1   : > { %s785_s25 = scalar_lea.vmem %s4661_s0, %s2701_s27  ;;  %s4047_s22 = scalar_lea.vmem %s4663_s6, %s3252_s19 }
  0xb2   : > { %s2704_s28 = sshll.u32 %s4025_s11, 2  ;;  %s4667_s8 = sld [smem:[#allocation43_spill]] }
  0xb3   : > { %s4668_s6 = sld [smem:[#allocation41_spill]]  ;;  %s4669_s27 = sand.u32 1, %s3614_s1  }
  0xb4   : > { %s4052_s0 = scalar_lea.vmem %s4664_s15, %s2734_s9  ;;  %s4072_s9 = scalar_lea.vmem [#allocation10], %s2699_s10 }
  0xb5   : > { %s4076_s29 = scalar_lea.vmem [#allocation11], %s4669_s27  ;;  %p2705_p13 = scmp.ne.s32.totalorder %s3634_s2, 0 }
  0xb6   : > { %s806_s21 = scalar_lea.vmem %s4665_s16, %s4025_s11  ;;  %s809_s23 = scalar_lea.vmem %s4666_s26, %s4025_s11  ;;  %v821_v0 = vld [vmem:[%s785_s25] sm:$0xff] (!%p2705_p13) }
  0xb7   : > { %820 = sbr.rel (%p2705_p13) target bundleno = 193 (0xc1), region = 104  ;;  %s4670_s12 = sld [smem:[#allocation33_spill]] (!%p2705_p13) }
  0xb8   : > { %s816_s13 = scalar_lea.vmem %s4667_s8, %s4025_s11 }
  0xb9   : > { %s4070_s14 = scalar_lea.vmem %s4668_s6, %s2704_s28 }
  0xbd   : > { %v822_v1 = vld [vmem:[%s4670_s12] sm:$0xff] (!%p2705_p13) }
  0xbe   : > { %v823_v2 = vadd.f32 %v822_v1, %v821_v0 }
  0xc0   : > { %824 = vst [vmem:[#allocation2] sm:$0xff] %v823_v2 }
  0xc1 PF: > { %v855_v4 = vld [vmem:[%s4006_s7 + $0x8] sm:$0xff]  ;;  %v858_v5 = vld [vmem:[%s4006_s7 + $0x20] sm:$0xff]  ;;  %v3662_v8 = vmov 0.0|0.0   ;;  %v857_v9 = vld [vmem:[%s4006_s7 + $0x18] sm:$0xff]  ;;  %v3663_v60 = vmov 0.0   ;;  %vm3664_vm0 = vmmov 0   ;;  %s4671_s8 = scalar_lea.vmem %s4577_s3, %s4025_s11  ;;  %s4672_s25 = scalar_lea.vmem %s4578_s4, %s4025_s11 }
  0xc2   : > { %v854_v6 = vld [vmem:[%s4006_s7] sm:$0xff]  ;;  %v3017_v7 = vpack.c.bf16 %v858_v5, %v855_v4  ;;  %3049 = vmatprep.subr.bf16.mxu1 %v3662_v8  ;;  %v856_v10 = vld [vmem:[%s4006_s7 + $0x10] sm:$0xff]  ;;  %v859_v11 = vld [vmem:[%s4006_s7 + $0x28] sm:$0xff]  ;;  %983 = vmatprep.mubr.f32.mxu0 %v3663_v60  ;;  %vm1069_vm1 = vcmask 261120   ;;  %vm1146_vm5 = vcmask 64512   ;;  %s3667_s15 = smov 64  }
  0xc3   : > { %v3019_v12 = vpack.c.bf16 %v857_v9, %v854_v6  ;;  %v3050_v13 = vpack.c.bf16 %v859_v11, %v856_v10  ;;  %v861_v14 = vld [vmem:[%s4006_s7 + $0x38] sm:$0xff]  ;;  %v864_v15 = vld [vmem:[%s4006_s7 + $0x50] sm:$0xff]  ;;  %v863_v18 = vld [vmem:[%s4006_s7 + $0x48] sm:$0xff]  ;;  %2904 = vmatprep.mubr.msk.f32.mxu1 %vm3664_vm0, %v3663_v60  ;;  %s3668_s20 = smov 32   ;;  %s4673_s17 = sld [smem:[#allocation30_spill]]  ;;  %vm1740_vm6 = vcmask 523264  }
  0xc4   : > { %v860_v16 = vld [vmem:[%s4006_s7 + $0x30] sm:$0xff]  ;;  %3018 = vmatprep.subr.bf16.mxu0 %v3017_v7  ;;  %v3021_v17 = vpack.c.bf16 %v864_v15, %v861_v14  ;;  %v862_v19 = vld [vmem:[%s4006_s7 + $0x40] sm:$0xff]  ;;  %v865_v20 = vld [vmem:[%s4006_s7 + $0x58] sm:$0xff]  ;;  %vm1742_vm7 = vcmask 785408   ;;  %s4674_s28 = sld [smem:[#allocation37_spill]]  ;;  %p2728_p3 = scmp.ne.s32.totalorder %s3634_s2, 1 }
  0xc5   : > { %3020 = vmatpush1.bf16.msra.mxu0 %v3019_v12  ;;  %3051 = vmatpush3.bf16.msra.mxu1 %v3050_v13  ;;  %v3023_v21 = vpack.c.bf16 %v863_v18, %v860_v16  ;;  %v3053_v22 = vpack.c.bf16 %v865_v20, %v862_v19  ;;  %v867_v23 = vld [vmem:[%s4006_s7 + $0x68] sm:$0xff]  ;;  %v870_v24 = vld [vmem:[%s4006_s7 + $0x80] sm:$0xff]  ;;  %v869_v27 = vld [vmem:[%s4006_s7 + $0x78] sm:$0xff]  ;;  %vm2345_vm8 = vcmask (!%p2728_p3), 1040384   ;;  %vm3670_vm9 = vmmov (!%p2728_p3), 0   ;;  %s4682_s16 = sld [smem:[#allocation45_spill]] (!%p2728_p3) }
  0xc6   : > { %v866_v25 = vld [vmem:[%s4006_s7 + $0x60] sm:$0xff]  ;;  %3022 = vmatprep.subr.bf16.mxu0 %v3021_v17  ;;  %3052 = vmatprep.subr.bf16.mxu1 %v3662_v8  ;;  %v3025_v26 = vpack.c.bf16 %v870_v24, %v867_v23  ;;  %v868_v28 = vld [vmem:[%s4006_s7 + $0x70] sm:$0xff]  ;;  %v871_v29 = vld [vmem:[%s4006_s7 + $0x88] sm:$0xff]  ;;  %vm2449_vm10 = vcmask (!%p2728_p3), 516096  }
  0xc7   : > { %v4082_v3 = vld [vmem:[#allocation2] sm:$0xff]  ;;  %v3027_v30 = vpack.c.bf16 %v869_v27, %v866_v25  ;;  %v3056_v31 = vpack.c.bf16 %v871_v29, %v868_v28  ;;  %v876_v37 = vld [vmem:[%s4006_s7 + $0xb0] sm:$0xff]  ;;  %v875_v40 = vld [vmem:[%s4006_s7 + $0xa8] sm:$0xff]  ;;  %v904_v29 = vlaneseq }
  0xc8   : > { %828 = vadd.xlane.f32.xlu0 %v4082_v3  ;;  %v873_v36 = vld [vmem:[%s4006_s7 + $0x98] sm:$0xff]  ;;  %v872_v39 = vld [vmem:[%s4006_s7 + $0x90] sm:$0xff]  ;;  %v874_v41 = vld [vmem:[%s4006_s7 + $0xa0] sm:$0xff] }
  0xc9   : > { %3024 = vmatpush1.bf16.msra.mxu0 %v3023_v21  ;;  %3054 = vmatpush3.bf16.msra.mxu1 %v3053_v22  ;;  %v3029_v38 = vpack.c.bf16 %v876_v37, %v873_v36  ;;  %v3031_v42 = vpack.c.bf16 %v875_v40, %v872_v39  ;;  %v877_v43 = vld [vmem:[%s4006_s7 + $0xb8] sm:$0xff]  ;;  %v879_v45 = vld [vmem:[%s4006_s7 + $0xc8] sm:$0xff]  ;;  %v882_v46 = vld [vmem:[%s4006_s7 + $0xe0] sm:$0xff] }
  0xca   : > { %3026 = vmatprep.subr.bf16.mxu0 %v3025_v26  ;;  %3055 = vmatprep.subr.bf16.mxu1 %v3662_v8  ;;  %v3059_v44 = vpack.c.bf16 %v877_v43, %v874_v41  ;;  %v3033_v47 = vpack.c.bf16 %v882_v46, %v879_v45  ;;  %v878_v48 = vld [vmem:[%s4006_s7 + $0xc0] sm:$0xff]  ;;  %v881_v49 = vld [vmem:[%s4006_s7 + $0xd8] sm:$0xff]  ;;  %v880_v50 = vld [vmem:[%s4006_s7 + $0xd0] sm:$0xff]  ;;  %v1064_v46 = vand.u32 127, %v904_v29  ;;  %s4675_s30 = scalar_lea.vmem %s4674_s28, %s4025_s11 }
  0xcb   : > { %v3035_v51 = vpack.c.bf16 %v881_v49, %v878_v48  ;;  %v883_v52 = vld [vmem:[%s4006_s7 + $0xe8] sm:$0xff]  ;;  %v885_v53 = vld [vmem:[%s4006_s7 + $0xf8] sm:$0xff]  ;;  %v888_v54 = vld [vmem:[%s4006_s7 + $0x110] sm:$0xff] }
  0xcc   : > { %v3062_v55 = vpack.c.bf16 %v883_v52, %v880_v50  ;;  %v3037_v56 = vpack.c.bf16 %v888_v54, %v885_v53  ;;  %v884_v57 = vld [vmem:[%s4006_s7 + $0xf0] sm:$0xff]  ;;  %v887_v58 = vld [vmem:[%s4006_s7 + $0x108] sm:$0xff]  ;;  %v886_v59 = vld [vmem:[%s4006_s7 + $0x100] sm:$0xff]  ;;  %vm1066_vm3 = vcmp.lt.s32.totalorder %v1064_v46, 8 }
  0xcd   : > { %3028 = vmatpush1.bf16.msra.mxu0 %v3027_v30  ;;  %3057 = vmatpush3.bf16.msra.mxu1 %v3056_v31  ;;  %v3039_v61 = vpack.c.bf16 %v887_v58, %v884_v57  ;;  %v889_v62 = vld [vmem:[%s4006_s7 + $0x118] sm:$0xff]  ;;  %v891_v63 = vld [vmem:[%s4006_s7 + $0x128] sm:$0xff]  ;;  %v894_v0 = vld [vmem:[%s4006_s7 + $0x140] sm:$0xff]  ;;  %v4166_v30 = vshrl.u32 %v904_v29, 7 }
  0xce   : > { %3058 = vmatprep.subr.bf16.mxu1 %v3662_v8  ;;  %3030 = vmatprep.subr.bf16.mxu0 %v3029_v38  ;;  %v3065_v1 = vpack.c.bf16 %v889_v62, %v886_v59  ;;  %v3041_v2 = vpack.c.bf16 %v894_v0, %v891_v63  ;;  %v890_v4 = vld [vmem:[%s4006_s7 + $0x120] sm:$0xff]  ;;  %v893_v5 = vld [vmem:[%s4006_s7 + $0x138] sm:$0xff]  ;;  %v892_v6 = vld [vmem:[%s4006_s7 + $0x130] sm:$0xff] }
  0xcf   : > { %v895_v7 = vld [vmem:[%s4006_s7 + $0x148] sm:$0xff]  ;;  %v897_v9 = vld [vmem:[%s4006_s7 + $0x158] sm:$0xff]  ;;  %v900_v10 = vld [vmem:[%s4006_s7 + $0x170] sm:$0xff]  ;;  %v3043_v11 = vpack.c.bf16 %v893_v5, %v890_v4  ;;  %v906_v31 = vsub.s32 0, %v4166_v30  ;;  %vm1065_vm2 = vcmp.le.s32.totalorder %v1064_v46, %v4166_v30 }
  0xd0   : > { %v3068_v12 = vpack.c.bf16 %v895_v7, %v892_v6  ;;  %v3045_v13 = vpack.c.bf16 %v900_v10, %v897_v9  ;;  %v896_v14 = vld [vmem:[%s4006_s7 + $0x150] sm:$0xff]  ;;  %v899_v15 = vld [vmem:[%s4006_s7 + $0x168] sm:$0xff]  ;;  %v898_v16 = vld [vmem:[%s4006_s7 + $0x160] sm:$0xff] }
  0xd1   : > { %3032 = vmatpush1.bf16.msra.mxu0 %v3031_v42  ;;  %3060 = vmatpush3.bf16.msra.mxu1 %v3059_v44  ;;  %v901_v17 = vld [vmem:[%s4006_s7 + $0x178] sm:$0xff]  ;;  %v3047_v18 = vpack.c.bf16 %v899_v15, %v896_v14  ;;  %vm1067_vm4 = vmand %vm1065_vm2, %vm1066_vm3 }
  0xd2   : > { %3061 = vmatprep.subr.bf16.mxu1 %v3662_v8  ;;  %3034 = vmatprep.subr.bf16.mxu0 %v3033_v47  ;;  %v3071_v19 = vpack.c.bf16 %v901_v17, %v898_v16  ;;  %v2706_v24 = vld [vmem:[%s4671_s8] ss:$0 sm:$0xff]  ;;  %v3666_v47 = vmov -1e+30   ;;  %s4680_s8 = sld [smem:[#allocation46_spill]] (!%p2728_p3) }
  0xd3   : > { %v2707_v26 = vld [vmem:[%s4672_s25] ss:$0 sm:$0xff]  ;;  %v4196_v48 = vsel %vm1067_vm4, 0.0, %v3666_v47 }
  0xd5   : > { %3036 = vmatpush1.bf16.msra.mxu0 %v3035_v51  ;;  %3063 = vmatpush3.bf16.msra.mxu1 %v3062_v55 }
  0xd6   : > { %3038 = vmatprep.subr.bf16.mxu0 %v3037_v56  ;;  %3064 = vmatprep.subr.bf16.mxu1 %v3662_v8 }
  0xd9   : > { %3040 = vmatpush1.bf16.msra.mxu0 %v3039_v61  ;;  %3066 = vmatpush3.bf16.msra.mxu1 %v3065_v1 }
  0xda   : > { %3042 = vmatprep.subr.bf16.mxu0 %v3041_v2  ;;  %3067 = vmatprep.subr.bf16.mxu1 %v3662_v8 }
  0xdd   : > { %3044 = vmatpush1.bf16.msra.mxu0 %v3043_v11  ;;  %3069 = vmatpush3.bf16.msra.mxu1 %v3068_v12 }
  0xde   : > { %3046 = vmatprep.subr.bf16.mxu0 %v3045_v13  ;;  %3070 = vmatprep.subr.bf16.mxu1 %v3662_v8 }
  0xe1   : > { %3048 = vmatpush1.bf16.msra.mxu0 %v3047_v18  ;;  %3072 = vmatpush3.bf16.msra.mxu1 %v3071_v19 }
  0xe2   : > { %3073 = vmatprep.subr.bf16.mxu0 %v3662_v8  ;;  %2907 = vmatprep.subr.mxu1 %v3663_v60 }
 0x155   : > { %v829_v32 = vpop.xlane.xlu0 %828 }
 0x156   : > { %v831_v33 = vmul.f32 0.0078125, %v829_v32  ;;  %v902_v32 = vld [vmem:[%s4047_s22] sm:$0x7]  ;;  %s3665_s22 = smov 96  }
 0x158   : > { %v4108_v34 = vsub.f32 %v4082_v3, %v831_v33  ;;  %v910_v33 = vsub.s32 1, %v4166_v30 }
 0x15a   : > { %v833_v35 = vmul.f32 %v4108_v34, %v4108_v34  ;;  %v911_v36 = vrot.slane %v902_v32, %v910_v33 }
 0x15c   : > { %834 = vadd.xlane.f32.xlu0 %v833_v35  ;;  %v914_v35 = vsub.s32 2, %v4166_v30 }
 0x15e   : > { %v915_v42 = vrot.slane %v902_v32, %v914_v35 }
 0x1e9   : > { %v835_v20 = vpop.xlane.xlu0 %834 }
 0x1ea   : > { %v836_v21 = vmul.f32 0.0078125, %v835_v20 }
 0x1ec   : > { %v837_v22 = vadd.f32 1e-05, %v836_v21 }
 0x1ee   : > { %3382 = vrsqrt.f32 %v837_v22 }
 0x1f8   : > { %v3383_v23 = vpop.eup %3382 }
 0x1f9   : > { %v839_v25 = vmul.f32 %v3383_v23, %v4108_v34  ;;  %v907_v34 = vrot.slane %v902_v32, %v906_v31 }
 0x1fb   : > { %v846_v27 = vmul.f32 %v2706_v24, %v839_v25 }
 0x1fd   : > { %v853_v28 = vadd.f32 %v2707_v26, %v846_v27 }
 0x1ff   : > { %984 = vmatmul.mubr.f32.vlgmr.msra.gmra.mrb[0].mxu0 %v853_v28  ;;  %2905 = vmatmul.mubr.f32.vlgmr.msra.gmra.mrb[0].mxu1 %v853_v28 }
 0x200   : > { %2909 = vmatprep.mubr.msk.f32.mxu1 %vm3664_vm0, %v3663_v60  ;;  %2979 = vmatprep.mubr.msk.f32.mxu0 %vm3664_vm0, %v3663_v60 }
 0x2d2   : > { %v985_v37 = vpop.f32.mrb[0].mxu0  ;;  %v1056_v38 = vpop.f32.mrb[0].mxu1 }
 0x2d3   : > { %v986_v39 = vadd.f32 %v985_v37, %v907_v34  ;;  %v987_v40 = vpop.f32.mrb[1].mxu0  ;;  %v2906_v41 = vpop.f32.mrb[1].mxu1  ;;  %v4187_v45 = vadd.f32 %v1056_v38, %v915_v42 }
 0x2d4   : > { %v4178_v43 = vadd.f32 %v987_v40, %v911_v36 }
 0x2d5   : > { %v4184_v44 = vmul.f32 0.17677669, %v986_v39 }
 0x2d6   : > { %1233 = vrot.lane.b32.xlu0 %v4178_v43, %s3665_s22  ;;  %2908 = vmatpush3.xpose.msk.msra.mxu1 %vm1069_vm1, %v4178_v43 }
 0x2d7   : > { %2912 = vmatprep.subr.mxu1 %v3663_v60 }
 0x2d9   : > { %2910 = vmatmul.mubr.msk.f32.vlgmr.msra.gmra.mrb[2].mxu1 %vm1069_vm1, %v4184_v44 }
 0x2da   : > { %2913 = vmatpush3.msra.mxu1 %v4187_v45  ;;  %2914 = vmatprep.mubr.msk.f32.mxu1 %vm3664_vm0, %v3663_v60 }
 0x2db   : > { %2917 = vmatprep.subr.mxu1 %v3663_v60 }
 0x348   : > { %v1234_v62 = vpop.permute.xlu0 %1233 }
 0x3ac   : > { %v1142_v49 = vpop.f32.mrb[2].mxu1 }
 0x3ad   : > { %v1143_v50 = vadd.f32 %v1142_v49, %v4196_v48  ;;  %v2911_v51 = vpop.f32.mrb[3].mxu1 }
 0x3af   : > { %v1147_v52 = vsel %vm1146_vm5, %v1143_v50, -inf }
 0x3b0   : > { %1148 = vmax.xlane.f32.xlu1 %v1147_v52 }
 0x43d   : > { %v1149_v53 = vpop.xlane.xlu1 %1148 }
 0x43e   : > { %v1150_v54 = vsub.f32 %v1143_v50, %v1149_v53 }
 0x440   : > { %v1151_v55 = vmul.f32 1.442695, %v1150_v54 }
 0x442   : > { %3384 = vpow2.f32 %v1151_v55  ;;  %v1744_v55 = vld [vmem:[%s4052_s0] sm:$0xff] }
 0x44c   : > { %v3385_v56 = vpop.eup %3384 }
 0x44d   : > { %v1153_v57 = vsel %vm1146_vm5, %v3385_v56, 0.0 }
 0x44e   : > { %1154 = vadd.xlane.f32.xlu1 %v1153_v57  ;;  %v1746_v57 = vld [vmem:[%s4052_s0 + $0x10] sm:$0xff] }
 0x45f   : > { %1231 = vrot.lane.b32.xlu1 %v4184_v44, %s3665_s22 }
 0x4db   : > { %v1155_v58 = vpop.xlane.xlu1 %1154 }
 0x4dc   : > { %3386 = vrcp.f32 %v1155_v58 }
 0x4df   : > { %v1232_v63 = vpop.permute.xlu1 %1231 }
 0x4e6   : > { %v3387_v59 = vpop.eup %3386 }
 0x4e7   : > { %v1157_v61 = vmul.f32 %v3387_v59, %v3385_v56  ;;  %v1745_v56 = vld [vmem:[%s4052_s0 + $0x8] sm:$0xff]  ;;  %v1747_v59 = vld [vmem:[%s4052_s0 + $0x18] sm:$0xff] }
 0x4e8   : > { %v3074_v58 = vpack.c.bf16 %v1745_v56, %v1744_v55  ;;  %v1882_v55 = vld [vmem:[%s4673_s17 + $0x88] sm:$0xff] }
 0x4e9   : > { %2915 = vmatmul.mubr.msk.f32.vlgmr.msra.gmra.mrb[4].mxu1 %vm1146_vm5, %v1157_v61  ;;  %v3077_v61 = vpack.c.bf16 %v1747_v59, %v1746_v57  ;;  %v1886_v56 = vld [vmem:[%s4673_s17 + $0xa8] sm:$0xff]  ;;  %v1884_v59 = vld [vmem:[%s4673_s17 + $0x98] sm:$0xff] }
 0x4ea   : > { %2918 = vmatpush3.xpose.msk.msra.mxu1 %vm1069_vm1, %v1234_v62  ;;  %2919 = vmatprep.mubr.msk.f32.mxu1 %vm3664_vm0, %v3663_v60  ;;  %v1748_v62 = vld [vmem:[%s4052_s0 + $0x20] sm:$0xff] }
 0x4eb   : > { %2922 = vmatprep.subr.mxu1 %v3663_v60  ;;  %3075 = vmatpush3.bf16.msra.mxu0 %v3074_v58  ;;  %v3105_v58 = vpack.c.bf16 %v1886_v56, %v1882_v55  ;;  %v1917_v56 = vld [vmem:[%s4673_s17 + $0x1a0] sm:$0xff] }
 0x4ec   : > { %3076 = vmatprep.subr.bf16.mxu0 %v3662_v8 }
 0x4ed   : > { %2920 = vmatmul.mubr.msk.f32.vlgmr.msra.gmra.mrb[6].mxu1 %vm1069_vm1, %v1232_v63  ;;  %v1749_v63 = vld [vmem:[%s4052_s0 + $0x28] sm:$0xff] }
 0x4ee   : > { %2924 = vmatprep.mubr.msk.f32.mxu1 %vm3664_vm0, %v3663_v60 }
 0x4ef   : > { %3078 = vmatpush3.bf16.msra.mxu0 %v3077_v61  ;;  %v1888_v61 = vld [vmem:[%s4673_s17 + $0xb8] sm:$0xff] }
 0x4f0   : > { %3079 = vmatprep.subr.bf16.mxu0 %v3662_v8 }
 0x5bc   : > { %v4211_v0 = vpop.f32.mrb[4].mxu1 }
 0x5bd   : > { %v2916_v1 = vpop.f32.mrb[5].mxu1 }
 0x5be   : > { %v3080_v1 = vpack.c.bf16 %v1749_v63, %v1748_v62  ;;  %v1881_v62 = vld [vmem:[%s4673_s17 + $0x80] sm:$0xff]  ;;  %v3137_v63 = vpack.c.bf16 %v1888_v61, %v1884_v59  ;;  %v1922_v61 = vld [vmem:[%s4673_s17 + $0x1c8] sm:$0xff] }
 0x5c0   : > { %v1305_v2 = vpop.f32.mrb[6].mxu1  ;;  %3081 = vmatpush3.bf16.msra.mxu0 %v3080_v1  ;;  %v1885_v1 = vld [vmem:[%s4673_s17 + $0xa0] sm:$0xff] }
 0x5c1   : > { %v1306_v4 = vadd.f32 %v1305_v2, %v4196_v48  ;;  %v2921_v5 = vpop.f32.mrb[7].mxu1  ;;  %v1750_v2 = vld [vmem:[%s4052_s0 + $0x30] sm:$0xff]  ;;  %3082 = vmatprep.subr.bf16.mxu0 %v3662_v8 }
 0x5c3   : > { %v1309_v6 = vsel %vm1146_vm5, %v1306_v4, -inf }
 0x5c4   : > { %1310 = vmax.xlane.f32.xlu1 %v1309_v6  ;;  %v1752_v6 = vld [vmem:[%s4052_s0 + $0x40] sm:$0xff] }
 0x5d5   : > { %1399 = vrot.lane.b32.xlu1 %v4178_v43, %s3667_s15 }
 0x5d9   : > { %1397 = vrot.lane.b32.xlu1 %v4184_v44, %s3667_s15 }
 0x651   : > { %v1311_v7 = vpop.xlane.xlu1 %1310 }
 0x652   : > { %v1312_v9 = vsub.f32 %v1306_v4, %v1311_v7  ;;  %v1751_v4 = vld [vmem:[%s4052_s0 + $0x38] sm:$0xff]  ;;  %v1753_v7 = vld [vmem:[%s4052_s0 + $0x48] sm:$0xff] }
 0x653   : > { %v3083_v5 = vpack.c.bf16 %v1751_v4, %v1750_v2  ;;  %v1883_v2 = vld [vmem:[%s4673_s17 + $0x90] sm:$0xff] }
 0x654   : > { %v1313_v10 = vmul.f32 1.442695, %v1312_v9  ;;  %v3086_v9 = vpack.c.bf16 %v1753_v7, %v1752_v6  ;;  %v1887_v4 = vld [vmem:[%s4673_s17 + $0xb0] sm:$0xff] }
 0x655   : > { %v1400_v16 = vpop.permute.xlu1 %1399  ;;  %3084 = vmatpush3.bf16.msra.mxu0 %v3083_v5  ;;  %v3107_v5 = vpack.c.bf16 %v1885_v1, %v1881_v62  ;;  %v3139_v6 = vpack.c.bf16 %v1887_v4, %v1883_v2  ;;  %v1926_v62 = vld [vmem:[%s4673_s17 + $0x1e8] sm:$0xff]  ;;  %v1928_v4 = vld [vmem:[%s4673_s17 + $0x1f8] sm:$0xff] }
 0x656   : > { %3388 = vpow2.f32 %v1313_v10  ;;  %3085 = vmatprep.subr.bf16.mxu0 %v3662_v8  ;;  %v1754_v10 = vld [vmem:[%s4052_s0 + $0x50] sm:$0xff]  ;;  %v3125_v2 = vpack.c.bf16 %v1926_v62, %v1922_v61  ;;  %v2148_v61 = vld [vmem:[%s4072_s9 + $0xb8] sm:$0xff]  ;;  %v2179_v62 = vld [vmem:[%s4072_s9 + $0x1b0] sm:$0xff] }
 0x659   : > { %v1398_v18 = vpop.permute.xlu1 %1397  ;;  %3087 = vmatpush3.bf16.msra.mxu0 %v3086_v9 }
 0x65a   : > { %3088 = vmatprep.subr.bf16.mxu0 %v3662_v8 }
 0x660   : > { %v3389_v11 = vpop.eup %3388 }
 0x661   : > { %v1315_v12 = vsel %vm1146_vm5, %v3389_v11, 0.0 }
 0x662   : > { %1316 = vadd.xlane.f32.xlu0 %v1315_v12 }
 0x678   : > { %1321 = vrot.lane.b32.xlu0 %v4187_v45, %s3665_s22 }
 0x6ef   : > { %v1317_v13 = vpop.xlane.xlu0 %1316 }
 0x6f0   : > { %3390 = vrcp.f32 %v1317_v13  ;;  %v1756_v13 = vld [vmem:[%s4052_s0 + $0x60] sm:$0xff] }
 0x6f3   : > { %v1322_v14 = vpop.permute.xlu0 %1321 }
 0x6f4   : > { %2923 = vmatpush3.msra.mxu1 %v1322_v14  ;;  %v1757_v14 = vld [vmem:[%s4052_s0 + $0x68] sm:$0xff] }
 0x6f5   : > { %2927 = vmatprep.subr.mxu1 %v3663_v60 }
 0x6fa   : > { %v3391_v15 = vpop.eup %3390 }
 0x6fb   : > { %v1319_v17 = vmul.f32 %v3391_v15, %v3389_v11  ;;  %v1755_v11 = vld [vmem:[%s4052_s0 + $0x58] sm:$0xff]  ;;  %v3092_v15 = vpack.c.bf16 %v1757_v14, %v1756_v13  ;;  %v1894_v13 = vld [vmem:[%s4673_s17 + $0xe8] sm:$0xff] }
 0x6fc   : > { %v3089_v12 = vpack.c.bf16 %v1755_v11, %v1754_v10  ;;  %v1892_v14 = vld [vmem:[%s4673_s17 + $0xd8] sm:$0xff] }
 0x6fd   : > { %2925 = vmatmul.mubr.msk.f32.vlgmr.msra.gmra.mrb[8].mxu1 %vm1146_vm5, %v1319_v17  ;;  %v1759_v17 = vld [vmem:[%s4052_s0 + $0x78] sm:$0xff] }
 0x6fe   : > { %2928 = vmatpush3.xpose.msk.msra.mxu1 %vm1069_vm1, %v1400_v16  ;;  %2929 = vmatprep.mubr.msk.f32.mxu1 %vm3664_vm0, %v3663_v60  ;;  %v1758_v16 = vld [vmem:[%s4052_s0 + $0x70] sm:$0xff] }
 0x6ff   : > { %2932 = vmatprep.subr.mxu1 %v3663_v60  ;;  %3090 = vmatpush3.bf16.msra.mxu0 %v3089_v12  ;;  %v1890_v12 = vld [vmem:[%s4673_s17 + $0xc8] sm:$0xff] }
 0x700   : > { %3091 = vmatprep.subr.bf16.mxu0 %v3662_v8 }
 0x701   : > { %2930 = vmatmul.mubr.msk.f32.vlgmr.msra.gmra.mrb[10].mxu1 %vm1069_vm1, %v1398_v18  ;;  %v3095_v18 = vpack.c.bf16 %v1759_v17, %v1758_v16  ;;  %v1896_v16 = vld [vmem:[%s4673_s17 + $0xf8] sm:$0xff]  ;;  %v1889_v17 = vld [vmem:[%s4673_s17 + $0xc0] sm:$0xff] }
 0x702   : > { %2934 = vmatprep.mubr.msk.f32.mxu1 %vm3664_vm0, %v3663_v60 }
 0x703   : > { %3093 = vmatpush3.bf16.msra.mxu0 %v3092_v15  ;;  %v3109_v15 = vpack.c.bf16 %v1894_v13, %v1890_v12 }
 0x704   : > { %3094 = vmatprep.subr.bf16.mxu0 %v3662_v8 }
 0x707   : > { %3096 = vmatpush3.bf16.msra.mxu0 %v3095_v18  ;;  %v1893_v18 = vld [vmem:[%s4673_s17 + $0xe0] sm:$0xff] }
 0x7d0   : > { %v1393_v19 = vpop.f32.mrb[8].mxu1 }
 0x7d1   : > { %v2926_v20 = vpop.f32.mrb[9].mxu1 }
 0x7d4   : > { %v1471_v21 = vpop.f32.mrb[10].mxu1 }
 0x7d5   : > { %v1472_v22 = vadd.f32 %v1471_v21, %v4196_v48  ;;  %v2931_v23 = vpop.f32.mrb[11].mxu1 }
 0x7d7   : > { %v1475_v24 = vsel %vm1146_vm5, %v1472_v22, -inf }
 0x7d8   : > { %1476 = vmax.xlane.f32.xlu1 %v1475_v24 }
 0x7e9   : > { %1564 = vrot.lane.b32.xlu1 %v4178_v43, %s3668_s20 }
 0x7ed   : > { %1562 = vrot.lane.b32.xlu1 %v4184_v44, %s3668_s20 }
 0x865   : > { %v1477_v25 = vpop.xlane.xlu1 %1476 }
 0x866   : > { %v1478_v26 = vsub.f32 %v1472_v22, %v1477_v25 }
 0x868   : > { %v1479_v27 = vmul.f32 1.442695, %v1478_v26 }
 0x869   : > { %v1565_v37 = vpop.permute.xlu1 %1564 }
 0x86a   : > { %3392 = vpow2.f32 %v1479_v27 }
 0x86d   : > { %v1563_v39 = vpop.permute.xlu1 %1562 }
 0x874   : > { %v3393_v28 = vpop.eup %3392 }
 0x875   : > { %v1481_v29 = vsel %vm1146_vm5, %v3393_v28, 0.0 }
 0x876   : > { %1482 = vadd.xlane.f32.xlu0 %v1481_v29 }
 0x88c   : > { %1486 = vrot.lane.b32.xlu0 %v4187_v45, %s3667_s15 }
 0x903   : > { %v1483_v32 = vpop.xlane.xlu0 %1482 }
 0x904   : > { %3394 = vrcp.f32 %v1483_v32  ;;  %v1866_v32 = vld [vmem:[%s4673_s17 + $0x8] sm:$0xff] }
 0x907   : > { %v1487_v34 = vpop.permute.xlu0 %1486 }
 0x908   : > { %2933 = vmatpush3.msra.mxu1 %v1487_v34  ;;  %v1868_v34 = vld [vmem:[%s4673_s17 + $0x18] sm:$0xff] }
 0x909   : > { %2937 = vmatprep.subr.mxu1 %v3663_v60 }
 0x90e   : > { %v3395_v36 = vpop.eup %3394 }
 0x90f   : > { %v1485_v38 = vmul.f32 %v3395_v36, %v3393_v28 }
 0x911   : > { %2935 = vmatmul.mubr.msk.f32.vlgmr.msra.gmra.mrb[12].mxu1 %vm1146_vm5, %v1485_v38  ;;  %v1865_v38 = vld [vmem:[%s4673_s17] sm:$0xff] }
 0x912   : > { %2938 = vmatpush3.xpose.msk.msra.mxu1 %vm1069_vm1, %v1565_v37  ;;  %2939 = vmatprep.mubr.msk.f32.mxu1 %vm3664_vm0, %v3663_v60  ;;  %v1872_v37 = vld [vmem:[%s4673_s17 + $0x38] sm:$0xff] }
 0x913   : > { %2942 = vmatprep.subr.mxu1 %v3663_v60 }
 0x915   : > { %2940 = vmatmul.mubr.msk.f32.vlgmr.msra.gmra.mrb[14].mxu1 %vm1069_vm1, %v1563_v39  ;;  %v1869_v39 = vld [vmem:[%s4673_s17 + $0x20] sm:$0xff] }
 0x916   : > { %2944 = vmatprep.mubr.msk.f32.mxu1 %vm3664_vm0, %v3663_v60 }
 0x9e4   : > { %v1558_v40 = vpop.f32.mrb[12].mxu1 }
 0x9e5   : > { %v2936_v41 = vpop.f32.mrb[13].mxu1 }
 0x9e6   : > { %v3099_v41 = vpack.c.bf16 %v1869_v39, %v1865_v38  ;;  %v1910_v39 = vld [vmem:[%s4673_s17 + $0x168] sm:$0xff] }
 0x9e8   : > { %v1636_v42 = vpop.f32.mrb[14].mxu1 }
 0x9e9   : > { %v1637_v43 = vadd.f32 %v1636_v42, %v4196_v48  ;;  %v2941_v44 = vpop.f32.mrb[15].mxu1  ;;  %v1867_v42 = vld [vmem:[%s4673_s17 + $0x10] sm:$0xff] }
 0x9eb   : > { %v1640_v46 = vsel %vm1146_vm5, %v1637_v43, -inf }
 0x9ec   : > { %1641 = vmax.xlane.f32.xlu0 %v1640_v46  ;;  %v1878_v46 = vld [vmem:[%s4673_s17 + $0x68] sm:$0xff] }
 0xa02   : > { %1651 = vrot.lane.b32.xlu0 %v4187_v45, %s3668_s20 }
 0xa06   : > { %1732 = vrot.lane.b32.xlu0 %v1558_v40, %s3667_s15  ;;  %v3129_v40 = vpack.c.bf16 %v1872_v37, %v1868_v34  ;;  %v1899_v34 = vld [vmem:[%s4673_s17 + $0x110] sm:$0xff]  ;;  %v1906_v37 = vld [vmem:[%s4673_s17 + $0x148] sm:$0xff] }
 0xa08   : > { %3130 = vmatprep.subr.bf16.mxu0 %v3129_v40  ;;  %v1908_v40 = vld [vmem:[%s4673_s17 + $0x158] sm:$0xff] }
 0xa79   : > { %v1642_v47 = vpop.xlane.xlu0 %1641 }
 0xa7a   : > { %v1643_v49 = vsub.f32 %v1637_v43, %v1642_v47  ;;  %v1874_v43 = vld [vmem:[%s4673_s17 + $0x48] sm:$0xff]  ;;  %v1876_v47 = vld [vmem:[%s4673_s17 + $0x58] sm:$0xff] }
 0xa7c   : > { %v1644_v50 = vmul.f32 1.442695, %v1643_v49  ;;  %v1880_v49 = vld [vmem:[%s4673_s17 + $0x78] sm:$0xff] }
 0xa7d   : > { %v1652_v51 = vpop.permute.xlu0 %1651 }
 0xa7e   : > { %3396 = vpow2.f32 %v1644_v50  ;;  %2943 = vmatpush3.msra.mxu1 %v1652_v51  ;;  %v3101_v50 = vpack.c.bf16 %v1878_v46, %v1874_v43  ;;  %v3133_v51 = vpack.c.bf16 %v1880_v49, %v1876_v47  ;;  %v1905_v43 = vld [vmem:[%s4673_s17 + $0x140] sm:$0xff]  ;;  %v1907_v46 = vld [vmem:[%s4673_s17 + $0x150] sm:$0xff] }
 0xa7f   : > { %v1911_v49 = vld [vmem:[%s4673_s17 + $0x170] sm:$0xff] }
 0xa81   : > { %v1733_v23 = vpop.permute.xlu0 %1732 }
 0xa88   : > { %v3397_v48 = vpop.eup %3396 }
 0xa89   : > { %v1646_v52 = vsel %vm1146_vm5, %v3397_v48, 0.0 }
 0xa8a   : > { %1647 = vadd.xlane.f32.xlu1 %v1646_v52  ;;  %v1877_v52 = vld [vmem:[%s4673_s17 + $0x60] sm:$0xff] }
 0xa9b   : > { %1728 = vrot.lane.b32.xlu1 %v1393_v19, %s3668_s20  ;;  %s4681_s20 = sld [smem:[#allocation44_spill]] (!%p2728_p3) }
 0xb17   : > { %v1648_v45 = vpop.xlane.xlu1 %1647 }
 0xb18   : > { %3398 = vrcp.f32 %v1648_v45  ;;  %v1875_v45 = vld [vmem:[%s4673_s17 + $0x50] sm:$0xff] }
 0xb1b   : > { %v1729_v21 = vpop.permute.xlu1 %1728 }
 0xb1c   : > { %v1739_v22 = vsel %vm1069_vm1, %v4211_v0, %v1729_v21  ;;  %v2720_v0 = vld [vmem:[%s4675_s30] ss:$0 sm:$0xff]  ;;  %v1891_v21 = vld [vmem:[%s4673_s17 + $0xd0] sm:$0xff] }
 0xb1d   : > { %v1741_v24 = vsel %vm1740_vm6, %v1739_v22, %v1733_v23  ;;  %v1895_v22 = vld [vmem:[%s4673_s17 + $0xf0] sm:$0xff] }
 0xb1e   : > { %v3143_v23 = vpack.c.bf16 %v1895_v22, %v1891_v21 }
 0xb22   : > { %v3399_v53 = vpop.eup %3398 }
 0xb23   : > { %v1650_v54 = vmul.f32 %v3399_v53, %v3397_v48  ;;  %v1873_v48 = vld [vmem:[%s4673_s17 + $0x40] sm:$0xff] }
 0xb24   : > { %v3103_v53 = vpack.c.bf16 %v1877_v52, %v1873_v48  ;;  %v3151_v48 = vpack.c.bf16 %v1911_v49, %v1907_v46  ;;  %v2160_v46 = vld [vmem:[%s4072_s9 + $0x118] sm:$0xff]  ;;  %v2145_v49 = vld [vmem:[%s4072_s9 + $0xa0] sm:$0xff] }
 0xb25   : > { %2945 = vmatmul.mubr.msk.f32.vlgmr.msra.gmra.mrb[16].mxu1 %vm1146_vm5, %v1650_v54  ;;  %v1879_v54 = vld [vmem:[%s4673_s17 + $0x70] sm:$0xff] }
 0xb26   : > { %2015 = vmatprep.mubr.f32.mxu1 %v3663_v60  ;;  %v3135_v57 = vpack.c.bf16 %v1879_v54, %v1875_v45  ;;  %v1916_v45 = vld [vmem:[%s4673_s17 + $0x198] sm:$0xff]  ;;  %v1913_v54 = vld [vmem:[%s4673_s17 + $0x180] sm:$0xff] }
 0xb27   : > { %v3123_v59 = vpack.c.bf16 %v1917_v56, %v1913_v54  ;;  %v2161_v56 = vld [vmem:[%s4072_s9 + $0x120] sm:$0xff] }
 0xbf8   : > { %v1723_v19 = vpop.f32.mrb[16].mxu1 }
 0xbf9   : > { %1736 = vrot.lane.b32.xlu1 %v1723_v19, %s3665_s22  ;;  %v2946_v20 = vpop.f32.mrb[17].mxu1  ;;  %v3141_v19 = vpack.c.bf16 %v1896_v16, %v1892_v14 }
 0xbfa   : > { %v3111_v20 = vpack.c.bf16 %v1893_v18, %v1889_v17  ;;  %v2721_v18 = vld [vmem:[%s806_s21] ss:$0 sm:$0xff] }
 0xc6b   : > { %v1737_v25 = vpop.permute.xlu1 %1736 }
 0xc6c   : > { %v1743_v8 = vsel %vm1742_vm7, %v1741_v24, %v1737_v25  ;;  %v1898_v24 = vld [vmem:[%s4673_s17 + $0x108] sm:$0xff] }
 0xc6d   : > { %2980 = vmatmul.mubr.f32.vlgmr.msra.gmra.mrb[2].mxu0 %v1743_v8  ;;  %v1902_v25 = vld [vmem:[%s4673_s17 + $0x128] sm:$0xff]  ;;  %v1900_v8 = vld [vmem:[%s4673_s17 + $0x118] sm:$0xff] }
 0xc6e   : > { %2086 = vmatprep.mubr.f32.mxu0 %v3663_v60  ;;  %v1870_v60 = vld [vmem:[%s4673_s17 + $0x28] sm:$0xff] }
 0xc6f   : > { %v3097_v36 = vpack.c.bf16 %v1870_v60, %v1866_v32 }
 0xc71   : > { %3098 = vmatprep.subr.bf16.mxu1 %v3097_v36  ;;  %v1903_v36 = vld [vmem:[%s4673_s17 + $0x130] sm:$0xff] }
 0xc72   : > { %3100 = vmatpush1.bf16.msra.mxu1 %v3099_v41  ;;  %v3147_v38 = vpack.c.bf16 %v1903_v36, %v1899_v34  ;;  %v1912_v41 = vld [vmem:[%s4673_s17 + $0x178] sm:$0xff] }
 0xc73   : > { %3102 = vmatprep.subr.bf16.mxu1 %v3101_v50  ;;  %v1914_v50 = vld [vmem:[%s4673_s17 + $0x188] sm:$0xff]  ;;  %v2143_v36 = vld [vmem:[%s4072_s9 + $0x90] sm:$0xff] }
 0xc76   : > { %3104 = vmatpush1.bf16.msra.mxu1 %v3103_v53  ;;  %v1920_v53 = vld [vmem:[%s4673_s17 + $0x1b8] sm:$0xff] }
 0xc77   : > { %3106 = vmatprep.subr.bf16.mxu1 %v3105_v58  ;;  %v3153_v55 = vpack.c.bf16 %v1920_v53, %v1916_v45  ;;  %v1919_v58 = vld [vmem:[%s4673_s17 + $0x1b0] sm:$0xff]  ;;  %v2129_v45 = vld [vmem:[%s4072_s9 + $0x20] sm:$0xff] }
 0xc78   : > { %v2130_v53 = vld [vmem:[%s4072_s9 + $0x28] sm:$0xff] }
 0xc7a   : > { %3108 = vmatpush1.bf16.msra.mxu1 %v3107_v5  ;;  %v1921_v5 = vld [vmem:[%s4673_s17 + $0x1c0] sm:$0xff] }
 0xc7b   : > { %3110 = vmatprep.subr.bf16.mxu1 %v3109_v15 }
 0xc7e   : > { %3112 = vmatpush1.bf16.msra.mxu1 %v3111_v20  ;;  %v2722_v20 = vld [vmem:[%s809_s23] ss:$0 sm:$0xff] }
 0xd40   : > { %v1833_v26 = vpop.f32.mrb[2].mxu0 }
 0xd41   : > { %v1834_v27 = vadd.f32 %v2720_v0, %v1833_v26  ;;  %v2981_v28 = vpop.f32.mrb[3].mxu0  ;;  %v3113_v0 = vpack.c.bf16 %v1902_v25, %v1898_v24  ;;  %v1904_v26 = vld [vmem:[%s4673_s17 + $0x138] sm:$0xff]  ;;  %v2142_v24 = vld [vmem:[%s4072_s9 + $0x88] sm:$0xff]  ;;  %v2173_v25 = vld [vmem:[%s4072_s9 + $0x180] sm:$0xff] }
 0xd42   : > { %v1901_v28 = vld [vmem:[%s4673_s17 + $0x120] sm:$0xff]  ;;  %v3145_v32 = vpack.c.bf16 %v1904_v26, %v1900_v8  ;;  %v2126_v26 = vld [vmem:[%s4072_s9 + $0x8] sm:$0xff] }
 0xd43   : > { %v4291_v29 = vadd.f32 %v1834_v27, %v4082_v3  ;;  %v1871_v3 = vld [vmem:[%s4673_s17 + $0x30] sm:$0xff]  ;;  %v1897_v27 = vld [vmem:[%s4673_s17 + $0x100] sm:$0xff]  ;;  %3114 = vmatprep.subr.bf16.mxu1 %v3113_v0 }
 0xd44   : > { %v3131_v44 = vpack.c.bf16 %v1871_v3, %v1867_v42  ;;  %v3115_v60 = vpack.c.bf16 %v1901_v28, %v1897_v27  ;;  %v3117_v42 = vpack.c.bf16 %v1910_v39, %v1906_v37  ;;  %v3149_v3 = vpack.c.bf16 %v1912_v41, %v1908_v40  ;;  %v2174_v0 = vld [vmem:[%s4072_s9 + $0x188] sm:$0xff]  ;;  %v2144_v37 = vld [vmem:[%s4072_s9 + $0x98] sm:$0xff]  ;;  %v2127_v41 = vld [vmem:[%s4072_s9 + $0x10] sm:$0xff] }
 0xd45   : > { %1840 = vadd.xlane.f32.xlu0 %v4291_v29  ;;  %v3193_v27 = vpack.c.bf16 %v2174_v0, %v2173_v25  ;;  %v3165_v39 = vpack.c.bf16 %v2144_v37, %v2143_v36  ;;  %v2176_v40 = vld [vmem:[%s4072_s9 + $0x198] sm:$0xff]  ;;  %v2153_v37 = vld [vmem:[%s4072_s9 + $0xe0] sm:$0xff] }
 0xd46   : > { %3132 = vmatpush1.bf16.msra.mxu0 %v3131_v44  ;;  %3116 = vmatpush1.bf16.msra.mxu1 %v3115_v60  ;;  %v1909_v44 = vld [vmem:[%s4673_s17 + $0x160] sm:$0xff]  ;;  %v2158_v60 = vld [vmem:[%s4072_s9 + $0x108] sm:$0xff] }
 0xd47   : > { %3134 = vmatprep.subr.bf16.mxu0 %v3133_v51  ;;  %v3119_v47 = vpack.c.bf16 %v1909_v44, %v1905_v43  ;;  %v1918_v51 = vld [vmem:[%s4673_s17 + $0x1a8] sm:$0xff]  ;;  %3118 = vmatprep.subr.bf16.mxu1 %v3117_v42  ;;  %v2128_v42 = vld [vmem:[%s4072_s9 + $0x18] sm:$0xff]  ;;  %v2159_v44 = vld [vmem:[%s4072_s9 + $0x110] sm:$0xff] }
 0xd48   : > { %v3121_v52 = vpack.c.bf16 %v1918_v51, %v1914_v50  ;;  %v3167_v43 = vpack.c.bf16 %v2128_v42, %v2127_v41  ;;  %v2146_v50 = vld [vmem:[%s4072_s9 + $0xa8] sm:$0xff]  ;;  %v2177_v51 = vld [vmem:[%s4072_s9 + $0x1a0] sm:$0xff]  ;;  %v2152_v25 = vld [vmem:[%s4072_s9 + $0xd8] sm:$0xff] }
 0xd49   : > { %v2186_v41 = vld [vmem:[%s4072_s9 + $0x1e8] sm:$0xff]  ;;  %v2137_v42 = vld [vmem:[%s4072_s9 + $0x60] sm:$0xff] }
 0xd4a   : > { %3136 = vmatpush1.bf16.msra.mxu0 %v3135_v57  ;;  %v1915_v57 = vld [vmem:[%s4673_s17 + $0x190] sm:$0xff]  ;;  %3120 = vmatpush1.bf16.msra.mxu1 %v3119_v47  ;;  %v3199_v47 = vpack.c.bf16 %v2160_v46, %v2159_v44  ;;  %v2169_v46 = vld [vmem:[%s4072_s9 + $0x160] sm:$0xff] }
 0xd4b   : > { %3138 = vmatprep.subr.bf16.mxu0 %v3137_v63  ;;  %v1924_v63 = vld [vmem:[%s4673_s17 + $0x1d8] sm:$0xff]  ;;  %3122 = vmatprep.subr.bf16.mxu1 %v3121_v52  ;;  %v3155_v1 = vpack.c.bf16 %v1919_v58, %v1915_v57  ;;  %v2178_v52 = vld [vmem:[%s4072_s9 + $0x1a8] sm:$0xff] }
 0xd4c   : > { %v3201_v54 = vpack.c.bf16 %v2178_v52, %v2177_v51  ;;  %v2162_v57 = vld [vmem:[%s4072_s9 + $0x128] sm:$0xff]  ;;  %v2156_v51 = vld [vmem:[%s4072_s9 + $0xf8] sm:$0xff] }
 0xd4d   : > { %v3203_v58 = vpack.c.bf16 %v2162_v57, %v2161_v56  ;;  %v2171_v57 = vld [vmem:[%s4072_s9 + $0x170] sm:$0xff] }
 0xd4e   : > { %3140 = vmatpush1.bf16.msra.mxu0 %v3139_v6  ;;  %v1925_v6 = vld [vmem:[%s4673_s17 + $0x1e0] sm:$0xff]  ;;  %3124 = vmatpush1.bf16.msra.mxu1 %v3123_v59  ;;  %v2147_v59 = vld [vmem:[%s4072_s9 + $0xb0] sm:$0xff] }
 0xd4f   : > { %3142 = vmatprep.subr.bf16.mxu0 %v3141_v19  ;;  %v3127_v12 = vpack.c.bf16 %v1925_v6, %v1921_v5  ;;  %3126 = vmatprep.subr.bf16.mxu1 %v3125_v2  ;;  %v2131_v2 = vld [vmem:[%s4072_s9 + $0x30] sm:$0xff] }
 0xd52   : > { %3144 = vmatpush1.bf16.msra.mxu0 %v3143_v23  ;;  %3128 = vmatpush1.bf16.msra.mxu1 %v3127_v12  ;;  %v2141_v23 = vld [vmem:[%s4072_s9 + $0x80] sm:$0xff] }
 0xd53   : > { %3146 = vmatprep.subr.bf16.mxu0 %v3145_v32  ;;  %v3161_v8 = vpack.c.bf16 %v2142_v24, %v2141_v23  ;;  %v2157_v32 = vld [vmem:[%s4072_s9 + $0x100] sm:$0xff]  ;;  %v2151_v24 = vld [vmem:[%s4072_s9 + $0xd0] sm:$0xff] }
 0xd54   : > { %v3195_v34 = vpack.c.bf16 %v2158_v60, %v2157_v32  ;;  %v2149_v12 = vld [vmem:[%s4072_s9 + $0xc0] sm:$0xff]  ;;  %v3181_v0 = vpack.c.bf16 %v2152_v25, %v2151_v24  ;;  %v2167_v60 = vld [vmem:[%s4072_s9 + $0x150] sm:$0xff] }
 0xd55   : > { %3162 = vmatprep.subr.bf16.mxu1 %v3161_v8  ;;  %v2183_v8 = vld [vmem:[%s4072_s9 + $0x1d0] sm:$0xff] }
 0xd56   : > { %3148 = vmatpush1.bf16.msra.mxu0 %v3147_v38  ;;  %v2175_v38 = vld [vmem:[%s4072_s9 + $0x190] sm:$0xff] }
 0xd57   : > { %3150 = vmatprep.subr.bf16.mxu0 %v3149_v3  ;;  %v3197_v3 = vpack.c.bf16 %v2176_v40, %v2175_v38  ;;  %v2154_v38 = vld [vmem:[%s4072_s9 + $0xe8] sm:$0xff] }
 0xd58   : > { %v3185_v40 = vpack.c.bf16 %v2154_v38, %v2153_v37  ;;  %v2727_v38 = vld [vmem:[%s816_s13] ss:$0 sm:$0xff] }
 0xd5a   : > { %3152 = vmatpush1.bf16.msra.mxu0 %v3151_v48  ;;  %v3169_v48 = vpack.c.bf16 %v2146_v50, %v2145_v49  ;;  %v2155_v50 = vld [vmem:[%s4072_s9 + $0xf0] sm:$0xff] }
 0xd5b   : > { %3154 = vmatprep.subr.bf16.mxu0 %v3153_v55  ;;  %v3171_v55 = vpack.c.bf16 %v2130_v53, %v2129_v45  ;;  %v3189_v52 = vpack.c.bf16 %v2156_v51, %v2155_v50  ;;  %v2188_v45 = vld [vmem:[%s4072_s9 + $0x1f8] sm:$0xff]  ;;  %v2139_v53 = vld [vmem:[%s4072_s9 + $0x70] sm:$0xff]  ;;  %v2365_v50 = vld [vmem:[%s4680_s8 + $0x10] sm:$0xff] (!%p2728_p3)  ;;  %v3669_v51 = vmov (!%p2728_p3), 0.0|0.0  }
 0xd5e   : > { %3156 = vmatpush1.bf16.msra.mxu0 %v3155_v1  ;;  %v2180_v1 = vld [vmem:[%s4072_s9 + $0x1b8] sm:$0xff] }
 0xd5f   : > { %v3205_v5 = vpack.c.bf16 %v2180_v1, %v2179_v62  ;;  %v1945_v62 = vsub.s32 3, %v4166_v30 }
 0xdd2   : > { %v1841_v7 = vpop.xlane.xlu0 %1840 }
 0xdd3   : > { %v1842_v9 = vmul.f32 0.0078125, %v1841_v7  ;;  %v3157_v7 = vpack.c.bf16 %v1928_v4, %v1924_v63  ;;  %v3173_v63 = vpack.c.bf16 %v2148_v61, %v2147_v59  ;;  %v2132_v4 = vld [vmem:[%s4072_s9 + $0x38] sm:$0xff] }
 0xdd4   : > { %v3175_v6 = vpack.c.bf16 %v2132_v4, %v2131_v2  ;;  %v1929_v61 = vld [vmem:[%s4070_s14] sm:$0xf] }
 0xdd5   : > { %v4319_v10 = vsub.f32 %v4291_v29, %v1842_v9  ;;  %v1923_v9 = vld [vmem:[%s4673_s17 + $0x1d0] sm:$0xff]  ;;  %3158 = vmatprep.subr.bf16.mxu0 %v3157_v7  ;;  %v2163_v7 = vld [vmem:[%s4072_s9 + $0x130] sm:$0xff]  ;;  %v1942_v1 = vrot.slane %v1929_v61, %v914_v35  ;;  %v1938_v2 = vrot.slane %v1929_v61, %v910_v33  ;;  %v1946_v4 = vrot.slane %v1929_v61, %v1945_v62 }
 0xdd6   : > { %v2369_v62 = vld [vmem:[%s4680_s8 + $0x30] sm:$0xff] (!%p2728_p3) }
 0xdd7   : > { %v1844_v11 = vmul.f32 %v4319_v10, %v4319_v10 }
 0xdd9   : > { %1845 = vadd.xlane.f32.xlu1 %v1844_v11  ;;  %v1927_v11 = vld [vmem:[%s4673_s17 + $0x1f0] sm:$0xff] }
 0xdda   : > { %v3159_v13 = vpack.c.bf16 %v1927_v11, %v1923_v9  ;;  %v2164_v9 = vld [vmem:[%s4072_s9 + $0x138] sm:$0xff] }
 0xddb   : > { %v3207_v11 = vpack.c.bf16 %v2164_v9, %v2163_v7 }
 0xddc   : > { %3160 = vmatpush1.bf16.msra.mxu0 %v3159_v13  ;;  %v2150_v13 = vld [vmem:[%s4072_s9 + $0xc8] sm:$0xff] }
 0xddd   : > { %3194 = vmatprep.subr.bf16.mxu0 %v3193_v27  ;;  %v2136_v27 = vld [vmem:[%s4072_s9 + $0x58] sm:$0xff] }
 0xe66   : > { %v1846_v14 = vpop.xlane.xlu1 %1845 }
 0xe67   : > { %v1847_v15 = vmul.f32 0.0078125, %v1846_v14  ;;  %v2181_v14 = vld [vmem:[%s4072_s9 + $0x1c0] sm:$0xff] }
 0xe69   : > { %v1848_v16 = vadd.f32 1e-05, %v1847_v15  ;;  %v3177_v15 = vpack.c.bf16 %v2150_v13, %v2149_v12 }
 0xe6b   : > { %3400 = vrsqrt.f32 %v1848_v16  ;;  %v2182_v16 = vld [vmem:[%s4072_s9 + $0x1c8] sm:$0xff] }
 0xe75   : > { %v3401_v17 = vpop.eup %3400 }
 0xe76   : > { %v1850_v19 = vmul.f32 %v3401_v17, %v4319_v10  ;;  %v2125_v10 = vld [vmem:[%s4072_s9] sm:$0xff] }
 0xe77   : > { %v3163_v28 = vpack.c.bf16 %v2126_v26, %v2125_v10  ;;  %v2133_v17 = vld [vmem:[%s4072_s9 + $0x40] sm:$0xff]  ;;  %v2184_v10 = vld [vmem:[%s4072_s9 + $0x1d8] sm:$0xff]  ;;  %v2135_v26 = vld [vmem:[%s4072_s9 + $0x50] sm:$0xff] }
 0xe78   : > { %v1857_v21 = vmul.f32 %v2721_v18, %v1850_v19  ;;  %v2134_v18 = vld [vmem:[%s4072_s9 + $0x48] sm:$0xff]  ;;  %v3209_v19 = vpack.c.bf16 %v2182_v16, %v2181_v14  ;;  %v3183_v32 = vpack.c.bf16 %v2136_v27, %v2135_v26 }
 0xe7a   : > { %v1864_v22 = vadd.f32 %v2722_v20, %v1857_v21  ;;  %v3179_v20 = vpack.c.bf16 %v2134_v18, %v2133_v17  ;;  %v2165_v21 = vld [vmem:[%s4072_s9 + $0x140] sm:$0xff] }
 0xe7c   : > { %2016 = vmatmul.mubr.f32.vlgmr.msra.gmra.mrb[18].mxu1 %v1864_v22  ;;  %2087 = vmatmul.mubr.f32.vlgmr.msra.gmra.mrb[4].mxu0 %v1864_v22  ;;  %v2166_v22 = vld [vmem:[%s4072_s9 + $0x148] sm:$0xff] }
 0xe7d   : > { %3164 = vmatpush3.bf16.msra.mxu1 %v3163_v28  ;;  %3196 = vmatpush3.bf16.msra.mxu0 %v3195_v34  ;;  %v3211_v23 = vpack.c.bf16 %v2166_v22, %v2165_v21  ;;  %v3213_v28 = vpack.c.bf16 %v2184_v10, %v2183_v8  ;;  %v2168_v34 = vld [vmem:[%s4072_s9 + $0x158] sm:$0xff] }
 0xe7e   : > { %3166 = vmatprep.subr.bf16.mxu1 %v3165_v39  ;;  %3198 = vmatprep.subr.bf16.mxu0 %v3197_v3  ;;  %v3215_v36 = vpack.c.bf16 %v2168_v34, %v2167_v60  ;;  %v2185_v39 = vld [vmem:[%s4072_s9 + $0x1e0] sm:$0xff]  ;;  %v2138_v3 = vld [vmem:[%s4072_s9 + $0x68] sm:$0xff] }
 0xe7f   : > { %v3187_v44 = vpack.c.bf16 %v2138_v3, %v2137_v42 }
 0xe81   : > { %3168 = vmatpush3.bf16.msra.mxu1 %v3167_v43  ;;  %3200 = vmatpush3.bf16.msra.mxu0 %v3199_v47  ;;  %v3217_v43 = vpack.c.bf16 %v2186_v41, %v2185_v39  ;;  %v2170_v47 = vld [vmem:[%s4072_s9 + $0x168] sm:$0xff] }
 0xe82   : > { %3170 = vmatprep.subr.bf16.mxu1 %v3169_v48  ;;  %3202 = vmatprep.subr.bf16.mxu0 %v3201_v54  ;;  %v3219_v49 = vpack.c.bf16 %v2170_v47, %v2169_v46  ;;  %v2187_v48 = vld [vmem:[%s4072_s9 + $0x1f0] sm:$0xff]  ;;  %v2140_v54 = vld [vmem:[%s4072_s9 + $0x78] sm:$0xff] }
 0xe83   : > { %v3191_v56 = vpack.c.bf16 %v2140_v54, %v2139_v53  ;;  %v2367_v53 = vld [vmem:[%s4680_s8 + $0x20] sm:$0xff] (!%p2728_p3)  ;;  %v2368_v54 = vld [vmem:[%s4680_s8 + $0x28] sm:$0xff] (!%p2728_p3) }
 0xe85   : > { %3172 = vmatpush3.bf16.msra.mxu1 %v3171_v55  ;;  %3204 = vmatpush3.bf16.msra.mxu0 %v3203_v58  ;;  %v3221_v55 = vpack.c.bf16 %v2188_v45, %v2187_v48  ;;  %v2172_v58 = vld [vmem:[%s4072_s9 + $0x178] sm:$0xff]  ;;  %s4679_s9 = sld [smem:[#allocation20_spill]] (!%p2728_p3) }
 0xe86   : > { %3174 = vmatprep.subr.bf16.mxu1 %v3173_v63  ;;  %3206 = vmatprep.subr.bf16.mxu0 %v3205_v5  ;;  %v3223_v59 = vpack.c.bf16 %v2172_v58, %v2171_v57  ;;  %v1934_v63 = vrot.slane %v1929_v61, %v906_v31 }
 0xe89   : > { %3176 = vmatpush3.bf16.msra.mxu1 %v3175_v6  ;;  %3208 = vmatpush3.bf16.msra.mxu0 %v3207_v11 }
 0xe8a   : > { %3178 = vmatprep.subr.bf16.mxu1 %v3177_v15  ;;  %3210 = vmatprep.subr.bf16.mxu0 %v3209_v19 }
 0xe8b   : > { %s2342_s5 = sld [smem:[#allocation4 + %s4679_s9]] (!%p2728_p3) }
 0xe8d   : > { %3180 = vmatpush3.bf16.msra.mxu1 %v3179_v20  ;;  %3212 = vmatpush3.bf16.msra.mxu0 %v3211_v23 }
 0xe8e   : > { %3182 = vmatprep.subr.bf16.mxu1 %v3181_v0  ;;  %3214 = vmatprep.subr.bf16.mxu0 %v3213_v28 }
 0xe91   : > { %3184 = vmatpush3.bf16.msra.mxu1 %v3183_v32  ;;  %3216 = vmatpush3.bf16.msra.mxu0 %v3215_v36  ;;  %s2343_s6 = scalar_lea.vmem (!%p2728_p3), [#allocation2], %s2342_s5 }
 0xe92   : > { %3186 = vmatprep.subr.bf16.mxu1 %v3185_v40  ;;  %3218 = vmatprep.subr.bf16.mxu0 %v3217_v43 }
 0xe95   : > { %3188 = vmatpush3.bf16.msra.mxu1 %v3187_v44  ;;  %3220 = vmatpush3.bf16.msra.mxu0 %v3219_v49  ;;  %v2363_v49 = vld [vmem:[%s4680_s8] sm:$0xff] (!%p2728_p3) }
 0xe96   : > { %3190 = vmatprep.subr.bf16.mxu1 %v3189_v52  ;;  %3222 = vmatprep.subr.bf16.mxu0 %v3221_v55  ;;  %v2366_v52 = vld [vmem:[%s4680_s8 + $0x18] sm:$0xff] (!%p2728_p3)  ;;  %v3232_v55 = vpack.c.bf16 (!%p2728_p3), %v2368_v54, %v2367_v53 }
 0xe97   : > { %v3229_v45 = vpack.c.bf16 (!%p2728_p3), %v2366_v52, %v2365_v50 }
 0xe99   : > { %3192 = vmatpush3.bf16.msra.mxu1 %v3191_v56  ;;  %3224 = vmatpush3.bf16.msra.mxu0 %v3223_v59 }
 0xe9a   : > { %3225 = vmatprep.subr.bf16.mxu0 (!%p2728_p3), %v3669_v51 }
 0xf4f   : > { %v2017_v5 = vpop.f32.mrb[18].mxu1  ;;  %v2088_v6 = vpop.f32.mrb[4].mxu0 }
 0xf50   : > { %v2018_v7 = vadd.f32 %v2017_v5, %v1934_v63  ;;  %v2089_v9 = vadd.f32 %v2088_v6, %v1942_v1  ;;  %v2019_v11 = vpop.f32.mrb[19].mxu1  ;;  %v2090_v12 = vpop.f32.mrb[5].mxu0  ;;  %v2370_v63 = vld [vmem:[%s4680_s8 + $0x38] sm:$0xff] (!%p2728_p3)  ;;  %v2373_v6 = vld [vmem:[%s4680_s8 + $0x50] sm:$0xff] (!%p2728_p3) }
 0xf51   : > { %v2020_v13 = vadd.f32 %v2019_v11, %v1938_v2  ;;  %v2091_v14 = vadd.f32 %v2090_v12, %v1946_v4  ;;  %v3235_v1 = vpack.c.bf16 (!%p2728_p3), %v2370_v63, %v2369_v62  ;;  %v2371_v2 = vld [vmem:[%s4680_s8 + $0x40] sm:$0xff] (!%p2728_p3)  ;;  %v2372_v4 = vld [vmem:[%s4680_s8 + $0x48] sm:$0xff] (!%p2728_p3) }
 0xf52   : > { %v2723_v15 = vmul.f32 -1.702, %v2018_v7  ;;  %v2725_v16 = vmul.f32 -1.702, %v2089_v9  ;;  %v3238_v5 = vpack.c.bf16 (!%p2728_p3), %v2372_v4, %v2371_v2  ;;  %v2375_v12 = vld [vmem:[%s4680_s8 + $0x60] sm:$0xff] (!%p2728_p3) }
 0xf53   : > { %v2724_v17 = vmul.f32 -1.702, %v2020_v13  ;;  %v2726_v18 = vmul.f32 -1.702, %v2091_v14 }
 0xf54   : > { %v2101_v31 = vmul.f32 1.442695, %v2723_v15  ;;  %v2105_v19 = vmul.f32 1.442695, %v2725_v16  ;;  %v2377_v15 = vld [vmem:[%s4680_s8 + $0x70] sm:$0xff] (!%p2728_p3)  ;;  %v2378_v16 = vld [vmem:[%s4680_s8 + $0x78] sm:$0xff] (!%p2728_p3) }
 0xf55   : > { %v2103_v20 = vmul.f32 1.442695, %v2724_v17  ;;  %v2107_v35 = vmul.f32 1.442695, %v2726_v18  ;;  %v3247_v17 = vpack.c.bf16 (!%p2728_p3), %v2378_v16, %v2377_v15 }
 0xf56   : > { %3402 = vpow2.f32 %v2101_v31 }
 0xf57   : > { %3404 = vpow2.f32 %v2105_v19 }
 0xf58   : > { %3406 = vpow2.f32 %v2103_v20 }
 0xf59   : > { %3408 = vpow2.f32 %v2107_v35  ;;  %v2359_v35 = vld [vmem:[%s4681_s20] sm:$0x1] (!%p2728_p3) }
 0xf60   : > { %v3403_v30 = vpop.eup %3402 }
 0xf61   : > { %v3405_v33 = vpop.eup %3404  ;;  %v2109_v21 = vadd.f32 1.0, %v3403_v30 }
 0xf62   : > { %v3407_v22 = vpop.eup %3406  ;;  %v2111_v23 = vadd.f32 1.0, %v3405_v33  ;;  %v2361_v33 = vld [vmem:[%s4682_s16] sm:$0x1] (!%p2728_p3) }
 0xf63   : > { %v3409_v24 = vpop.eup %3408  ;;  %3410 = vrcp.f32 %v2109_v21  ;;  %v2110_v25 = vadd.f32 1.0, %v3407_v22 }
 0xf64   : > { %3412 = vrcp.f32 %v2111_v23  ;;  %v2112_v8 = vadd.f32 1.0, %v3409_v24 }
 0xf65   : > { %3414 = vrcp.f32 %v2110_v25 }
 0xf66   : > { %3416 = vrcp.f32 %v2112_v8 }
 0xf6d   : > { %v3411_v0 = vpop.eup %3410 }
 0xf6e   : > { %v3413_v10 = vpop.eup %3412  ;;  %v2121_v32 = vmul.f32 %v3411_v0, %v2018_v7  ;;  %v2374_v7 = vld [vmem:[%s4680_s8 + $0x58] sm:$0xff] (!%p2728_p3) }
 0xf6f   : > { %v3415_v26 = vpop.eup %3414  ;;  %v2123_v34 = vmul.f32 %v3413_v10, %v2089_v9  ;;  %v3671_v9 = vmov (!%p2728_p3), 0.0   ;;  %v3241_v11 = vpack.c.bf16 (!%p2728_p3), %v2374_v7, %v2373_v6 }
 0xf70   : > { %v3417_v27 = vpop.eup %3416  ;;  %v2122_v28 = vmul.f32 %v3415_v26, %v2020_v13  ;;  %v2376_v13 = vld [vmem:[%s4680_s8 + $0x68] sm:$0xff] (!%p2728_p3) }
 0xf71   : > { %v2124_v60 = vmul.f32 %v3417_v27, %v2091_v14  ;;  %v3244_v14 = vpack.c.bf16 (!%p2728_p3), %v2376_v13, %v2375_v12 }
 0xf72   : > { %2260 = vmatprep.mubr.f32.mxu1 %v2122_v28 }
 0xf73   : > { %2330 = vmatprep.mubr.f32.mxu0 %v2124_v60  ;;  %2261 = vmatmul.mubr.f32.vlgmr.msra.gmra.mrb[20].mxu1 %v2121_v32 }
 0xf74   : > { %2331 = vmatmul.mubr.f32.vlgmr.msra.gmra.mrb[6].mxu0 %v2123_v34 }
 0xf75   : > { %3014 = vmatprep.mubr.msk.f32.mxu0 (!%p2728_p3), %vm3670_vm9, %v3671_v9 }
0x1046   : > { %v2817_v36 = vpop.f32.mrb[20].mxu1 }
0x1047   : > { %v2852_v37 = vpop.f32.mrb[6].mxu0  ;;  %v2818_v39 = vpop.f32.mrb[21].mxu1 }
0x1048   : > { %v2819_v40 = vadd.f32 %v2818_v39, %v2817_v36  ;;  %v2853_v41 = vpop.f32.mrb[7].mxu0 }
0x1049   : > { %v2854_v42 = vadd.f32 %v2853_v41, %v2852_v37 }
0x104a   : > { %v2263_v3 = vadd.f32 %v2819_v40, %v2727_v38  ;;  %2341 = sbr.rel (%p2728_p3) target bundleno = 4710 (0x1266), region = 108 }
0x104c   : > { %v2333_v43 = vadd.f32 %v2854_v42, %v2263_v3 }
0x104e   : > { %v2336_v44 = vadd.f32 %v2333_v43, %v4291_v29  ;;  %v2364_v29 = vld [vmem:[%s4680_s8 + $0x8] sm:$0xff] (!%p2728_p3) }
0x104f   : > { %v3226_v48 = vpack.c.bf16 (!%p2728_p3), %v2364_v29, %v2363_v49 }
0x1050   : > { %2337 = vst [vmem:[#allocation2] sm:$0xff] %v2336_v44 }
0x1051   : > { %3227 = vmatpush3.bf16.msra.mxu0 %v3226_v48 }
0x1052   : > { %3228 = vmatprep.subr.bf16.mxu0 %v3669_v51 }
0x1055   : > { %3230 = vmatpush3.bf16.msra.mxu0 %v3229_v45 }
0x1056   : > { %3231 = vmatprep.subr.bf16.mxu0 %v3669_v51 }
0x1057   : > { %v2344_v46 = vld [vmem:[%s2343_s6] sm:$0x1] }
0x1058   : > { %v2346_v47 = vsel %vm2345_vm8, %v2344_v46, 0.0 }
0x1059   : > { %2347 = vadd.xlane.f32.xlu0 %v2346_v47  ;;  %3233 = vmatpush3.bf16.msra.mxu0 %v3232_v55 }
0x105a   : > { %3234 = vmatprep.subr.bf16.mxu0 %v3669_v51 }
0x105d   : > { %3236 = vmatpush3.bf16.msra.mxu0 %v3235_v1 }
0x105e   : > { %3237 = vmatprep.subr.bf16.mxu0 %v3669_v51 }
0x1061   : > { %3239 = vmatpush3.bf16.msra.mxu0 %v3238_v5 }
0x1062   : > { %3240 = vmatprep.subr.bf16.mxu0 %v3669_v51 }
0x1065   : > { %3242 = vmatpush3.bf16.msra.mxu0 %v3241_v11 }
0x1066   : > { %3243 = vmatprep.subr.bf16.mxu0 %v3669_v51 }
0x1069   : > { %3245 = vmatpush3.bf16.msra.mxu0 %v3244_v14 }
0x106a   : > { %3246 = vmatprep.subr.bf16.mxu0 %v3669_v51 }
0x106d   : > { %3248 = vmatpush3.bf16.msra.mxu0 %v3247_v17 }
0x10e6   : > { %v2348_v56 = vpop.xlane.xlu0 %2347 }
0x10e7   : > { %v2349_v57 = vmul.f32 0.0078125, %v2348_v56 }
0x10e9   : > { %v2350_v58 = vsub.f32 %v2344_v46, %v2349_v57 }
0x10eb   : > { %v2351_v59 = vmul.f32 %v2350_v58, %v2350_v58 }
0x10ed   : > { %v2352_v61 = vsel %vm2345_vm8, %v2351_v59, 0.0 }
0x10ee   : > { %2353 = vadd.xlane.f32.xlu0 %v2352_v61 }
0x117b   : > { %v2354_v18 = vpop.xlane.xlu0 %2353 }
0x117c   : > { %v2355_v31 = vmul.f32 0.0078125, %v2354_v18 }
0x117e   : > { %v2356_v19 = vadd.f32 1e-05, %v2355_v31 }
0x1180   : > { %3418 = vrsqrt.f32 %v2356_v19 }
0x118a   : > { %v3419_v20 = vpop.eup %3418 }
0x118b   : > { %v2358_v30 = vmul.f32 %v3419_v20, %v2350_v58 }
0x118d   : > { %v2360_v21 = vmul.f32 %v2359_v35, %v2358_v30 }
0x118f   : > { %v2362_v22 = vadd.f32 %v2361_v33, %v2360_v21 }
0x1191   : > { %3015 = vmatmul.mubr.f32.vlgmr.msra.gmra.mrb[0].mxu0 %v2362_v22 }
0x1264   : > { %v2445_v23 = vpop.f32.mrb[0].mxu0 }
0x1265   : > { %2450 = vst.msk [vmem:[%s4076_s29] sm:$0x1] %vm2449_vm10, %v2445_v23  ;;  %v3016_v24 = vpop.f32.mrb[1].mxu0 }
0x1266 PF: > { %s4683_s28 = sld [smem:[#allocation20_spill]]  ;;  %s4684_s30 = sld [smem:[#allocation28_spill]] }
0x1267   : > { %s4685_s26 = sld [smem:[#allocation47_spill]]  ;;  %s2464_s23 = sshll.u32 %s4076_s29, 4  ;;  %s2465_s23 = int_to_ptr.vmem [resolvable:$true] %s2464_s23 }
0x1268   : > { %s4687_s14 = sand.u32 1, %s3614_s1   ;;  %s3522_s9 = scalar_lea.vmem %s2465_s23, 16 }
0x1269   : > { %s2452_s21 = scalar_lea.sflag [#allocation7], %s4687_s14  ;;  %p3523_p12 = scmp.ne.s32.totalorder %s2465_s23, %s3522_s9 }
0x126a   : > { %s3672_s5 = smov [#allocation11]  }
0x126b   : > { %s3526_s6 = sshll.u32 %s3672_s5, 4  ;;  %s3527_s6 = int_to_ptr.vmem [resolvable:$false] %s3526_s6 }
0x126c   : > { %s2729_s19 = sshll.u32 %s4683_s28, 4  ;;  %p4688_p2 = scmp.ne.s32.totalorder %s4684_s30, 0 }
0x126d   : > { %s4686_s18 = smov %s4685_s26  ;;  %s4515_s12 = scalar_lea.hbm %s4685_s26, %s2729_s19 }
0x126e   : > { %p3524_p5 = pnand %p3523_p12, %p4688_p2  ;;  %s3528_s11 = scalar_lea.vmem %s3527_s6, 32 }
0x126f   : > { %p3529_p4 = scmp.lt.s32.totalorder %s2465_s23, %s3527_s6  ;;  %p3530_p7 = scmp.lt.s32.totalorder %s3528_s11, %s3522_s9 }
0x1270   : > { %p3525_p6 = pneg %p3524_p5 }
0x1271   : > { %p3531_p11 = por %p3530_p7, %p3529_p4 }
0x1273   : > { %p3532_p0 = pnand %p3531_p11, %p3525_p6 }
0x1275   : > { %3535 = shalt.err (!%p3532_p0)
}
0x1276   : > { %s3536_s29 = scalar_lea.hbm %s4515_s12, 16  ;;  %s3540_s10 = scalar_lea.hbm %s4686_s18, 32 }
0x1277   : > { %p3537_p10 = scmp.ne.s32.totalorder %s4515_s12, %s3536_s29  ;;  %p3541_p1 = scmp.lt.u32.totalorder %s4515_s12, %s4686_s18 }
0x1278   : > { %p3542_p13 = scmp.lt.u32.totalorder %s3540_s10, %s3536_s29  ;;  %p3544_p12 = scmp.lt.u32.totalorder %s3536_s29, %s4515_s12 }
0x1279   : > { %p3538_p8 = pnand %p3537_p10, %p4688_p2 }
0x127a   : > { %p3543_p3 = por %p3542_p13, %p3541_p1 }
0x127b   : > { %p3539_p9 = pneg %p3538_p8 }
0x127c   : > { %p3545_p5 = por %p3544_p12, %p3543_p3 }
0x127e   : > { %p3546_p6 = pnand %p3545_p5, %p3539_p9 }
0x1280   : > { %3549 = shalt.err (!%p3546_p6)
}
0x1281   : > { %3259 = dma.vmem_to_hbm [thread:$0]  (%p4688_p2), %s2465_s23, 16, %s4515_s12, %s2452_s21  }
0x1282 PF: > { %s4689_s2 = sld [smem:[#allocation23_spill]]  ;;  %s4690_s15 = sld [smem:[#allocation16_spill]] }
0x1283   : > { %s4691_s20 = sld [smem:[#allocation29_spill]] }
0x1288   : > { %p3276_p4 = scmp.ge.s32.totalorder %s4689_s2, 2  ;;  %s2476_s17 = sand.u32 1, %s4690_s15  }
0x1289   : > { %p4692_p7 = scmp.ne.s32.totalorder %s4691_s20, 0  ;;  %s2477_s0 = scalar_lea.sflag [#allocation7], %s2476_s17 }
0x128b   : > { %p3272_p11 = pnand %p3276_p4, %p4692_p7 }
0x128d   : > { %3605 = dma.done.wait (!%p3272_p11), %s2477_s0, 16  }
0x128e   : > { %3607 = vsyncadd (!%p3272_p11), %s2477_s0, 4294967280  ;;  %s43_s26 = sadd.s32 1, %s4689_s2   ;;  %s4693_s16 = sld [smem:[#allocation17_spill]] }
0x128f   : > { %p40_p0 = scmp.ge.s32.totalorder %s43_s26, 6   ;;  %s4694_s20 = sld [smem:[#allocation27_spill]] }
0x1290   : > { %s4695_s21 = sld [smem:[#allocation18_spill]]  ;;  %s4696_s22 = sld [smem:[#allocation19_spill]] }
0x1291   : > { %s4697_s12 = sld [smem:[#allocation26_spill]]  ;;  %s4698_s2 = sld [smem:[#allocation21_spill]] }
0x1292   : > { %s4699_s23 = sld [smem:[#allocation22_spill]]  ;;  %s4700_s24 = sld [smem:[#allocation24_spill]] }
0x1293   : > { %s4701_s25 = sld [smem:[#allocation25_spill]]  ;;  %s4702_s19 = smov %s3614_s1 }
0x1294   : > { %s4703_s1 = smov %s4693_s16  ;;  %42 = sbr.rel (!%p40_p0) target bundleno = 38 (0x26), region = 196 }
0x129b   :  { %2481 = vsyncpa [#allocation6], 1 }
0x129c   :  { %2483 = vsyncpa [#allocation6 + $0x1], 1 }
0x129d   :  { %2484 = vsyncpa [#allocation9], 1 }
0x129e   :  { %2486 = vsyncpa [#allocation9 + $0x1], 1 }
0x129f   :  { %2487 = vsyncpa [#allocation7], 1 }
0x12a0   :  { %2489 = vsyncpa [#allocation7 + $0x1], 1 }

</bundles_post_ra>
